<compile_context>
chip_gen: v7x
topology: tpu7x:2x2x1
jax: 0.10.0
libtpu: 0.0.40
codegen_flags: <defaults>
</compile_context>

<pallas_src>
import jax
import jax.numpy as jnp
import numpy as np
from jax.experimental import pallas as pl
from jax.experimental.pallas import tpu as pltpu


def _local_classifier_kernel(
    s1_ref, s2_ref, a1_ref, a2_ref,
    wg1a_ref, wg1b_ref, bg1_ref, wg2_ref, bg2_ref,
    wh1a_ref, wh1b_ref, bh1_ref, wh2_ref, bh2_ref, wh3_ref, bh3_ref,
    out_ref,
):
    # One grid step == one tile of B_TILE batch examples.
    s1 = s1_ref[...]            # [Bt, L1, D]
    s2 = s2_ref[...]            # [Bt, L2, D]
    a1 = a1_ref[...]            # [Bt, L1, L2]
    a2 = a2_ref[...]            # [Bt, L2, L1]

    bt, L1, D = s1.shape
    L2 = s2.shape[1]
    Cp = wg2_ref.shape[0]       # lane-padded hidden size

    # Cross attention (batched matmul on the tile, f32 accumulate).
    attended2 = jnp.einsum("bij,bjd->bid", a1, s2,
                           preferred_element_type=jnp.float32)   # [Bt, L1, D]
    attended1 = jnp.einsum("bij,bjd->bid", a2, s1,
                           preferred_element_type=jnp.float32)   # [Bt, L2, D]

    # ---- g network, fused over both sentences -------------------------------
    # Stack rows of both sentences so the MXU sees one big M = Bt*(L1+L2).
    xf = jnp.concatenate([s1.reshape(bt * L1, D),
                          s2.reshape(bt * L2, D)], axis=0)        # [M, D]
    af = jnp.concatenate([attended2.reshape(bt * L1, D),
                          attended1.reshape(bt * L2, D)], axis=0)  # [M, D]

    # concat([x, att], -1) @ Wg1 == x @ Wg1[:D] + att @ Wg1[D:]
    z = (jnp.dot(xf, wg1a_ref[...], preferred_element_type=jnp.float32)
         + jnp.dot(af, wg1b_ref[...], preferred_element_type=jnp.float32)
         + bg1_ref[...])
    z = jnp.maximum(z, 0.0)
    z = jnp.dot(z, wg2_ref[...], preferred_element_type=jnp.float32) + bg2_ref[...]
    z = jnp.maximum(z, 0.0)                                       # [M, Cp]

    # Sum over each sentence's sequence axis -> [Bt, Cp] each.
    flat1 = jnp.sum(z[:bt * L1].reshape(bt, L1, Cp), axis=1)
    flat2 = jnp.sum(z[bt * L1:].reshape(bt, L2, Cp), axis=1)

    # ---- h network -----------------------------------------------------------
    # concat([flat1, flat2], -1) @ Wh1 == flat1 @ Wh1[:C] + flat2 @ Wh1[C:]
    h = (jnp.dot(flat1, wh1a_ref[...], preferred_element_type=jnp.float32)
         + jnp.dot(flat2, wh1b_ref[...], preferred_element_type=jnp.float32)
         + bh1_ref[...])
    h = jnp.maximum(h, 0.0)
    h = jnp.dot(h, wh2_ref[...], preferred_element_type=jnp.float32) + bh2_ref[...]
    h = jnp.maximum(h, 0.0)
    # wh3/bh3 are lane-padded to a multiple of 128; padded columns carry
    # bias = -1e30 so they contribute exp(.) == 0 to the softmax normalizer.
    y = jnp.dot(h, wh3_ref[...], preferred_element_type=jnp.float32) + bh3_ref[...]  # [Bt, NLp]

    # log_softmax over the (padded) label axis -- identical on real labels.
    m = jnp.max(y, axis=-1, keepdims=True)
    lse = m + jnp.log(jnp.sum(jnp.exp(y - m), axis=-1, keepdims=True))
    out_ref[...] = (y - lse).astype(out_ref.dtype)


def _round_up(x, m):
    return (x + m - 1) // m * m


def local_classifier_forward(sent1, sent2, att1, att2, params, *, block_b=128):
    B, L1, D = sent1.shape
    _, L2, _ = sent2.shape
    C = params["wg2"].shape[0]
    NL = params["wh3"].shape[1]

    wg1 = params["wg1"]          # [2D, C]
    wh1 = params["wh1"]          # [2C, C]
    assert wg1.shape[0] == 2 * D, "wg1 input dim must be exactly 2*D for concat split"
    assert wh1.shape[0] == 2 * C, "wh1 input dim must be exactly 2*C for concat split"

    # ---- batch tiling (B_TILE multiple of 8, batch padded up to a multiple of it)
    b_tile = _round_up(min(block_b, _round_up(B, 8)), 8)
    B_pad = _round_up(B, b_tile)
    grid = B_pad // b_tile

    def pad_batch(x):
        if B_pad == B:
            return x
        return jnp.pad(x, ((0, B_pad - B),) + ((0, 0),) * (x.ndim - 1))

    s1 = pad_batch(sent1)
    s2 = pad_batch(sent2)
    a1 = pad_batch(att1)
    a2 = pad_batch(att2)

    # ---- lane padding: hidden size -> multiple of 128, labels -> multiple of 128
    C_PAD = _round_up(C, 128)
    NL_PAD = _round_up(NL, 128)

    def pad2(w, rows, cols, cval=0.0):
        return jnp.pad(w, ((0, rows - w.shape[0]), (0, cols - w.shape[1])),
                       constant_values=cval)

    # Split concat-weights (weights are given pre-transposed as [in, out]).
    wg1a = pad2(wg1[:D], D, C_PAD)
    wg1b = pad2(wg1[D:], D, C_PAD)
    bg1 = pad2(params["bg1"], 1, C_PAD)
    wg2 = pad2(params["wg2"], C_PAD, C_PAD)
    bg2 = pad2(params["bg2"], 1, C_PAD)
    wh1a = pad2(wh1[:C], C_PAD, C_PAD)
    wh1b = pad2(wh1[C:], C_PAD, C_PAD)
    bh1 = pad2(params["bh1"], 1, C_PAD)
    wh2 = pad2(params["wh2"], C_PAD, C_PAD)
    bh2 = pad2(params["bh2"], 1, C_PAD)
    wh3 = pad2(params["wh3"], C_PAD, NL_PAD)
    # Padded label columns get bias -1e30 so they vanish from the softmax.
    bh3 = pad2(params["bh3"], 1, NL_PAD, cval=-1e30)

    const = lambda shape: pl.BlockSpec(shape, lambda b: (0,) * len(shape))

    grid_spec = pltpu.PrefetchScalarGridSpec(
        num_scalar_prefetch=0,
        grid=(grid,),
        in_specs=[
            pl.BlockSpec((b_tile, L1, D), lambda b: (b, 0, 0)),
            pl.BlockSpec((b_tile, L2, D), lambda b: (b, 0, 0)),
            pl.BlockSpec((b_tile, L1, L2), lambda b: (b, 0, 0)),
            pl.BlockSpec((b_tile, L2, L1), lambda b: (b, 0, 0)),
            const((D, C_PAD)), const((D, C_PAD)), const((1, C_PAD)),
            const((C_PAD, C_PAD)), const((1, C_PAD)),
            const((C_PAD, C_PAD)), const((C_PAD, C_PAD)), const((1, C_PAD)),
            const((C_PAD, C_PAD)), const((1, C_PAD)),
            const((C_PAD, NL_PAD)), const((1, NL_PAD)),
        ],
        out_specs=pl.BlockSpec((b_tile, NL_PAD), lambda b: (b, 0)),
    )

    # Advisory cost hint for XLA scheduling.
    flops = int(
        4 * B * L1 * L2 * D                                      # two bmms
        + 2 * B * (L1 + L2) * (2 * D * C_PAD + C_PAD * C_PAD)    # g network (fused)
        + 2 * B * (2 * C_PAD * C_PAD + C_PAD * C_PAD + C_PAD * NL_PAD)  # h network
    )
    bytes_accessed = int(
        4 * (sent1.size + sent2.size + att1.size + att2.size
             + sum(int(np.prod(v.shape)) for v in params.values())
             + B * NL)
    )
    cost = pl.CostEstimate(flops=flops, transcendentals=int(B * NL_PAD),
                           bytes_accessed=bytes_accessed)

    out = pl.pallas_call(
        _local_classifier_kernel,
        out_shape=jax.ShapeDtypeStruct((B_pad, NL_PAD), jnp.float32),
        grid_spec=grid_spec,
        compiler_params=pltpu.CompilerParams(dimension_semantics=("parallel",)),
        cost_estimate=cost,
    )(
        s1, s2, a1, a2,
        wg1a, wg1b, bg1,
        wg2, bg2,
        wh1a, wh1b, bh1,
        wh2, bh2, wh3, bh3,
    )
    return out[:B, :NL]


def reference_forward(sent1, sent2, att1, att2, params):
    """Pure-JAX reference mirroring the PyTorch module (inference mode)."""
    attended2 = jnp.einsum("bij,bjd->bid", att1, sent2)
    attended1 = jnp.einsum("bij,bjd->bid", att2, sent1)
    cat1 = jnp.concatenate([sent1, attended2], axis=2)
    cat2 = jnp.concatenate([sent2, attended1], axis=2)

    def g(x):
        z = jnp.maximum(x @ params["wg1"] + params["bg1"], 0.0)
        return jnp.maximum(z @ params["wg2"] + params["bg2"], 0.0)

    phi1 = g(cat1).sum(axis=1)
    phi2 = g(cat2).sum(axis=1)
    phi = jnp.concatenate([phi1, phi2], axis=1)
    h = jnp.maximum(phi @ params["wh1"] + params["bh1"], 0.0)
    h = jnp.maximum(h @ params["wh2"] + params["bh2"], 0.0)
    y = h @ params["wh3"] + params["bh3"]
    return jax.nn.log_softmax(y, axis=1)


def make_params(key, enc_size, cls_hidden, num_label):
    ks = jax.random.split(key, 12)
    n = lambda k, shape: (0.1 * jax.random.normal(k, shape)).astype(jnp.float32)
    return dict(
        wg1=n(ks[0], (enc_size, cls_hidden)),       bg1=n(ks[1], (1, cls_hidden)),
        wg2=n(ks[2], (cls_hidden, cls_hidden)),     bg2=n(ks[3], (1, cls_hidden)),
        wh1=n(ks[4], (cls_hidden * 2, cls_hidden)), bh1=n(ks[5], (1, cls_hidden)),
        wh2=n(ks[6], (cls_hidden, cls_hidden)),     bh2=n(ks[7], (1, cls_hidden)),
        wh3=n(ks[8], (cls_hidden, num_label)),      bh3=n(ks[9], (1, num_label)),
    )


if __name__ == "__main__":
    # opt: hidden_size=32 (sentence feature dim D == hidden_size), use_elmo_post=0
    #      -> enc_size = 2*hidden_size = 64; cls_hidden_size=64; num_label=3
    B, L1, L2, D = 16, 8, 16, 32
    enc_size, cls_hidden, num_label = 2 * D, 64, 3

    key = jax.random.PRNGKey(0)
    k1, k2, k3, k4, kp = jax.random.split(key, 5)
    sent1 = jax.random.normal(k1, (B, L1, D), dtype=jnp.float32)
    sent2 = jax.random.normal(k2, (B, L2, D), dtype=jnp.float32)
    # attention weights: softmax-normalized rows (as produced upstream by bmm+softmax)
    att1 = jax.nn.softmax(jax.random.normal(k3, (B, L1, L2), dtype=jnp.float32), axis=-1)
    att2 = jax.nn.softmax(jax.random.normal(k4, (B, L2, L1), dtype=jnp.float32), axis=-1)

    params = make_params(kp, enc_size, cls_hidden, num_label)

    # block_b=8 -> B_TILE=8, grid of 2 steps (exercises batch tiling / megacore path).
    out = local_classifier_forward(sent1, sent2, att1, att2, params, block_b=8)
    out = jax.block_until_ready(out)

    ref = jax.block_until_ready(reference_forward(sent1, sent2, att1, att2, params))
    np.testing.assert_allclose(np.asarray(out), np.asarray(ref), atol=1e-3, rtol=1e-3)

    print("KERNEL_OK")
</pallas_src>

<mosaic_0001>
module attributes {stable_mosaic.version = 11 : i64} {
  func.func @_local_classifier_kernel(%arg0: i32, %arg1: memref<8x8x32xf32, #tpu.memory_space<vmem>>, %arg2: memref<8x16x32xf32, #tpu.memory_space<vmem>>, %arg3: memref<8x8x16xf32, #tpu.memory_space<vmem>>, %arg4: memref<8x16x8xf32, #tpu.memory_space<vmem>>, %arg5: memref<32x128xf32, #tpu.memory_space<vmem>>, %arg6: memref<32x128xf32, #tpu.memory_space<vmem>>, %arg7: memref<1x128xf32, #tpu.memory_space<vmem>>, %arg8: memref<128x128xf32, #tpu.memory_space<vmem>>, %arg9: memref<1x128xf32, #tpu.memory_space<vmem>>, %arg10: memref<128x128xf32, #tpu.memory_space<vmem>>, %arg11: memref<128x128xf32, #tpu.memory_space<vmem>>, %arg12: memref<1x128xf32, #tpu.memory_space<vmem>>, %arg13: memref<128x128xf32, #tpu.memory_space<vmem>>, %arg14: memref<1x128xf32, #tpu.memory_space<vmem>>, %arg15: memref<128x128xf32, #tpu.memory_space<vmem>>, %arg16: memref<1x128xf32, #tpu.memory_space<vmem>>, %arg17: memref<8x128xf32, #tpu.memory_space<vmem>>) attributes {dimension_semantics = [#tpu.dimension_semantics<parallel>], iteration_bounds = array<i64: 2>, scalar_prefetch = 0 : i64, scratch_operands = 0 : i64, tpu.core_type = #tpu.core_type<tc>, window_params = [{transform_indices = @transform_0, window_bounds = array<i64: 8, 8, 32>}, {transform_indices = @transform_1, window_bounds = array<i64: 8, 16, 32>}, {transform_indices = @transform_2, window_bounds = array<i64: 8, 8, 16>}, {transform_indices = @transform_3, window_bounds = array<i64: 8, 16, 8>}, {pipeline_mode = #tpu.pipeline_mode<synchronous>, transform_indices = @transform_4, window_bounds = array<i64: 32, 128>}, {pipeline_mode = #tpu.pipeline_mode<synchronous>, transform_indices = @transform_5, window_bounds = array<i64: 32, 128>}, {pipeline_mode = #tpu.pipeline_mode<synchronous>, transform_indices = @transform_6, window_bounds = array<i64: 1, 128>}, {pipeline_mode = #tpu.pipeline_mode<synchronous>, transform_indices = @transform_7, window_bounds = array<i64: 128, 128>}, {pipeline_mode = #tpu.pipeline_mode<synchronous>, transform_indices = @transform_8, window_bounds = array<i64: 1, 128>}, {pipeline_mode = #tpu.pipeline_mode<synchronous>, transform_indices = @transform_9, window_bounds = array<i64: 128, 128>}, {pipeline_mode = #tpu.pipeline_mode<synchronous>, transform_indices = @transform_10, window_bounds = array<i64: 128, 128>}, {pipeline_mode = #tpu.pipeline_mode<synchronous>, transform_indices = @transform_11, window_bounds = array<i64: 1, 128>}, {pipeline_mode = #tpu.pipeline_mode<synchronous>, transform_indices = @transform_12, window_bounds = array<i64: 128, 128>}, {pipeline_mode = #tpu.pipeline_mode<synchronous>, transform_indices = @transform_13, window_bounds = array<i64: 1, 128>}, {pipeline_mode = #tpu.pipeline_mode<synchronous>, transform_indices = @transform_14, window_bounds = array<i64: 128, 128>}, {pipeline_mode = #tpu.pipeline_mode<synchronous>, transform_indices = @transform_15, window_bounds = array<i64: 1, 128>}, {transform_indices = @transform_16, window_bounds = array<i64: 8, 128>}]} {
    %c0 = arith.constant 0 : index
    %c0_0 = arith.constant 0 : index
    %c0_1 = arith.constant 0 : index
    %0 = vector.load %arg1[%c0, %c0_0, %c0_1] : memref<8x8x32xf32, #tpu.memory_space<vmem>>, vector<8x8x32xf32>
    %c0_2 = arith.constant 0 : index
    %c0_3 = arith.constant 0 : index
    %c0_4 = arith.constant 0 : index
    %1 = vector.load %arg2[%c0_2, %c0_3, %c0_4] : memref<8x16x32xf32, #tpu.memory_space<vmem>>, vector<8x16x32xf32>
    %c0_5 = arith.constant 0 : index
    %c0_6 = arith.constant 0 : index
    %c0_7 = arith.constant 0 : index
    %2 = vector.load %arg3[%c0_5, %c0_6, %c0_7] : memref<8x8x16xf32, #tpu.memory_space<vmem>>, vector<8x8x16xf32>
    %c0_8 = arith.constant 0 : index
    %c0_9 = arith.constant 0 : index
    %c0_10 = arith.constant 0 : index
    %3 = vector.load %arg4[%c0_8, %c0_9, %c0_10] : memref<8x16x8xf32, #tpu.memory_space<vmem>>, vector<8x16x8xf32>
    "tpu.trace_start"() <{level = 10 : i32, message = "bij,bjd->bid"}> : () -> ()
    %cst = arith.constant dense<0.000000e+00> : vector<8x8x32xf32>
    %4 = tpu.matmul %2, %1, %cst {dimension_numbers = #tpu.dot_dimension_numbers<[2], [1], [1], [2], [0, 0, 0, 1, 1, 2], [0], [0]>} : vector<8x8x16xf32>, vector<8x16x32xf32>, vector<8x8x32xf32> -> vector<8x8x32xf32>
    %cst_11 = arith.constant dense<0.000000e+00> : vector<8x16x32xf32>
    %5 = tpu.matmul %3, %0, %cst_11 {dimension_numbers = #tpu.dot_dimension_numbers<[2], [1], [1], [2], [0, 0, 0, 1, 1, 2], [0], [0]>} : vector<8x16x8xf32>, vector<8x8x32xf32>, vector<8x16x32xf32> -> vector<8x16x32xf32>
    "tpu.trace_stop"() : () -> ()
    %6 = vector.shape_cast %0 : vector<8x8x32xf32> to vector<64x32xf32>
    %7 = vector.shape_cast %1 : vector<8x16x32xf32> to vector<128x32xf32>
    %8 = tpu.concatenate %6, %7 in 0 : vector<64x32xf32>, vector<128x32xf32> -> vector<192x32xf32>
    %9 = vector.shape_cast %4 : vector<8x8x32xf32> to vector<64x32xf32>
    %10 = vector.shape_cast %5 : vector<8x16x32xf32> to vector<128x32xf32>
    %11 = tpu.concatenate %9, %10 in 0 : vector<64x32xf32>, vector<128x32xf32> -> vector<192x32xf32>
    %c0_12 = arith.constant 0 : index
    %c0_13 = arith.constant 0 : index
    %12 = vector.load %arg5[%c0_12, %c0_13] : memref<32x128xf32, #tpu.memory_space<vmem>>, vector<32x128xf32>
    %cst_14 = arith.constant dense<0.000000e+00> : vector<192x128xf32>
    %13 = tpu.matmul %8, %12, %cst_14 {dimension_numbers = #tpu.dot_dimension_numbers<[1], [0], [0], [1], [0, 0, 1, 1], [], []>} : vector<192x32xf32>, vector<32x128xf32>, vector<192x128xf32> -> vector<192x128xf32>
    %c0_15 = arith.constant 0 : index
    %c0_16 = arith.constant 0 : index
    %14 = vector.load %arg6[%c0_15, %c0_16] : memref<32x128xf32, #tpu.memory_space<vmem>>, vector<32x128xf32>
    %cst_17 = arith.constant dense<0.000000e+00> : vector<192x128xf32>
    %15 = tpu.matmul %11, %14, %cst_17 {dimension_numbers = #tpu.dot_dimension_numbers<[1], [0], [0], [1], [0, 0, 1, 1], [], []>} : vector<192x32xf32>, vector<32x128xf32>, vector<192x128xf32> -> vector<192x128xf32>
    %16 = arith.addf %13, %15 : vector<192x128xf32>
    %c0_18 = arith.constant 0 : index
    %c0_19 = arith.constant 0 : index
    %17 = vector.load %arg7[%c0_18, %c0_19] : memref<1x128xf32, #tpu.memory_space<vmem>>, vector<1x128xf32>
    %18 = vector.broadcast %17 : vector<1x128xf32> to vector<192x128xf32>
    %19 = arith.addf %16, %18 : vector<192x128xf32>
    %cst_20 = arith.constant 0.000000e+00 : f32
    %20 = vector.broadcast %cst_20 : f32 to vector<192x128xf32>
    %21 = arith.maximumf %19, %20 : vector<192x128xf32>
    %c0_21 = arith.constant 0 : index
    %c0_22 = arith.constant 0 : index
    %22 = vector.load %arg8[%c0_21, %c0_22] : memref<128x128xf32, #tpu.memory_space<vmem>>, vector<128x128xf32>
    %cst_23 = arith.constant dense<0.000000e+00> : vector<192x128xf32>
    %23 = tpu.matmul %21, %22, %cst_23 {dimension_numbers = #tpu.dot_dimension_numbers<[1], [0], [0], [1], [0, 0, 1, 1], [], []>} : vector<192x128xf32>, vector<128x128xf32>, vector<192x128xf32> -> vector<192x128xf32>
    %c0_24 = arith.constant 0 : index
    %c0_25 = arith.constant 0 : index
    %24 = vector.load %arg9[%c0_24, %c0_25] : memref<1x128xf32, #tpu.memory_space<vmem>>, vector<1x128xf32>
    %25 = vector.broadcast %24 : vector<1x128xf32> to vector<192x128xf32>
    %26 = arith.addf %23, %25 : vector<192x128xf32>
    %cst_26 = arith.constant 0.000000e+00 : f32
    %27 = vector.broadcast %cst_26 : f32 to vector<192x128xf32>
    %28 = arith.maximumf %26, %27 : vector<192x128xf32>
    %29 = vector.extract_strided_slice %28 {offsets = [0, 0], sizes = [64, 128], strides = [1, 1]} : vector<192x128xf32> to vector<64x128xf32>
    %30 = vector.shape_cast %29 : vector<64x128xf32> to vector<8x8x128xf32>
    %cst_27 = arith.constant dense<0.000000e+00> : vector<8x128xf32>
    %31 = vector.multi_reduction <add>, %30, %cst_27 [1] : vector<8x8x128xf32> to vector<8x128xf32>
    %32 = vector.extract_strided_slice %28 {offsets = [64, 0], sizes = [128, 128], strides = [1, 1]} : vector<192x128xf32> to vector<128x128xf32>
    %33 = vector.shape_cast %32 : vector<128x128xf32> to vector<8x16x128xf32>
    %cst_28 = arith.constant dense<0.000000e+00> : vector<8x128xf32>
    %34 = vector.multi_reduction <add>, %33, %cst_28 [1] : vector<8x16x128xf32> to vector<8x128xf32>
    %c0_29 = arith.constant 0 : index
    %c0_30 = arith.constant 0 : index
    %35 = vector.load %arg10[%c0_29, %c0_30] : memref<128x128xf32, #tpu.memory_space<vmem>>, vector<128x128xf32>
    %cst_31 = arith.constant dense<0.000000e+00> : vector<8x128xf32>
    %36 = tpu.matmul %31, %35, %cst_31 {dimension_numbers = #tpu.dot_dimension_numbers<[1], [0], [0], [1], [0, 0, 1, 1], [], []>} : vector<8x128xf32>, vector<128x128xf32>, vector<8x128xf32> -> vector<8x128xf32>
    %c0_32 = arith.constant 0 : index
    %c0_33 = arith.constant 0 : index
    %37 = vector.load %arg11[%c0_32, %c0_33] : memref<128x128xf32, #tpu.memory_space<vmem>>, vector<128x128xf32>
    %cst_34 = arith.constant dense<0.000000e+00> : vector<8x128xf32>
    %38 = tpu.matmul %34, %37, %cst_34 {dimension_numbers = #tpu.dot_dimension_numbers<[1], [0], [0], [1], [0, 0, 1, 1], [], []>} : vector<8x128xf32>, vector<128x128xf32>, vector<8x128xf32> -> vector<8x128xf32>
    %39 = arith.addf %36, %38 : vector<8x128xf32>
    %c0_35 = arith.constant 0 : index
    %c0_36 = arith.constant 0 : index
    %40 = vector.load %arg12[%c0_35, %c0_36] : memref<1x128xf32, #tpu.memory_space<vmem>>, vector<1x128xf32>
    %41 = vector.broadcast %40 : vector<1x128xf32> to vector<8x128xf32>
    %42 = arith.addf %39, %41 : vector<8x128xf32>
    %cst_37 = arith.constant 0.000000e+00 : f32
    %43 = vector.broadcast %cst_37 : f32 to vector<8x128xf32>
    %44 = arith.maximumf %42, %43 : vector<8x128xf32>
    %c0_38 = arith.constant 0 : index
    %c0_39 = arith.constant 0 : index
    %45 = vector.load %arg13[%c0_38, %c0_39] : memref<128x128xf32, #tpu.memory_space<vmem>>, vector<128x128xf32>
    %cst_40 = arith.constant dense<0.000000e+00> : vector<8x128xf32>
    %46 = tpu.matmul %44, %45, %cst_40 {dimension_numbers = #tpu.dot_dimension_numbers<[1], [0], [0], [1], [0, 0, 1, 1], [], []>} : vector<8x128xf32>, vector<128x128xf32>, vector<8x128xf32> -> vector<8x128xf32>
    %c0_41 = arith.constant 0 : index
    %c0_42 = arith.constant 0 : index
    %47 = vector.load %arg14[%c0_41, %c0_42] : memref<1x128xf32, #tpu.memory_space<vmem>>, vector<1x128xf32>
    %48 = vector.broadcast %47 : vector<1x128xf32> to vector<8x128xf32>
    %49 = arith.addf %46, %48 : vector<8x128xf32>
    %cst_43 = arith.constant 0.000000e+00 : f32
    %50 = vector.broadcast %cst_43 : f32 to vector<8x128xf32>
    %51 = arith.maximumf %49, %50 : vector<8x128xf32>
    %c0_44 = arith.constant 0 : index
    %c0_45 = arith.constant 0 : index
    %52 = vector.load %arg15[%c0_44, %c0_45] : memref<128x128xf32, #tpu.memory_space<vmem>>, vector<128x128xf32>
    %cst_46 = arith.constant dense<0.000000e+00> : vector<8x128xf32>
    %53 = tpu.matmul %51, %52, %cst_46 {dimension_numbers = #tpu.dot_dimension_numbers<[1], [0], [0], [1], [0, 0, 1, 1], [], []>} : vector<8x128xf32>, vector<128x128xf32>, vector<8x128xf32> -> vector<8x128xf32>
    %c0_47 = arith.constant 0 : index
    %c0_48 = arith.constant 0 : index
    %54 = vector.load %arg16[%c0_47, %c0_48] : memref<1x128xf32, #tpu.memory_space<vmem>>, vector<1x128xf32>
    %55 = vector.broadcast %54 : vector<1x128xf32> to vector<8x128xf32>
    %56 = arith.addf %53, %55 : vector<8x128xf32>
    %cst_49 = arith.constant dense<0xFF800000> : vector<8xf32>
    %57 = vector.multi_reduction <maximumf>, %56, %cst_49 [1] : vector<8x128xf32> to vector<8xf32>
    %58 = vector.shape_cast %57 : vector<8xf32> to vector<8x1xf32>
    %59 = vector.broadcast %58 : vector<8x1xf32> to vector<8x128xf32>
    %60 = arith.subf %56, %59 : vector<8x128xf32>
    %61 = math.exp %60 : vector<8x128xf32>
    %cst_50 = arith.constant dense<0.000000e+00> : vector<8xf32>
    %62 = vector.multi_reduction <add>, %61, %cst_50 [1] : vector<8x128xf32> to vector<8xf32>
    %63 = vector.shape_cast %62 : vector<8xf32> to vector<8x1xf32>
    %64 = math.log %63 : vector<8x1xf32>
    %65 = arith.addf %58, %64 : vector<8x1xf32>
    %66 = vector.broadcast %65 : vector<8x1xf32> to vector<8x128xf32>
    %67 = arith.subf %56, %66 : vector<8x128xf32>
    %c0_51 = arith.constant 0 : index
    %c0_52 = arith.constant 0 : index
    %68 = vector.load %arg17[%c0_51, %c0_52] : memref<8x128xf32, #tpu.memory_space<vmem>>, vector<8x128xf32>
    tpu.vector_store %arg17[%c0_51, %c0_52], %67 {strides = array<i32>} : memref<8x128xf32, #tpu.memory_space<vmem>>, vector<8x128xf32>,
    return
  }
  func.func @transform_0(%arg0: i32) -> (i32, i32, i32) {
    %c0_i32 = arith.constant 0 : i32
    %c0_i32_0 = arith.constant 0 : i32
    %c0_i32_1 = arith.constant 0 : i32
    return %arg0, %c0_i32, %c0_i32_0 : i32, i32, i32
  }
  func.func @transform_1(%arg0: i32) -> (i32, i32, i32) {
    %c0_i32 = arith.constant 0 : i32
    %c0_i32_0 = arith.constant 0 : i32
    %c0_i32_1 = arith.constant 0 : i32
    return %arg0, %c0_i32, %c0_i32_0 : i32, i32, i32
  }
  func.func @transform_2(%arg0: i32) -> (i32, i32, i32) {
    %c0_i32 = arith.constant 0 : i32
    %c0_i32_0 = arith.constant 0 : i32
    %c0_i32_1 = arith.constant 0 : i32
    return %arg0, %c0_i32, %c0_i32_0 : i32, i32, i32
  }
  func.func @transform_3(%arg0: i32) -> (i32, i32, i32) {
    %c0_i32 = arith.constant 0 : i32
    %c0_i32_0 = arith.constant 0 : i32
    %c0_i32_1 = arith.constant 0 : i32
    return %arg0, %c0_i32, %c0_i32_0 : i32, i32, i32
  }
  func.func @transform_4(%arg0: i32) -> (i32, i32) {
    %c0_i32 = arith.constant 0 : i32
    %c0_i32_0 = arith.constant 0 : i32
    %c0_i32_1 = arith.constant 0 : i32
    return %c0_i32, %c0_i32_0 : i32, i32
  }
  func.func @transform_5(%arg0: i32) -> (i32, i32) {
    %c0_i32 = arith.constant 0 : i32
    %c0_i32_0 = arith.constant 0 : i32
    %c0_i32_1 = arith.constant 0 : i32
    return %c0_i32, %c0_i32_0 : i32, i32
  }
  func.func @transform_6(%arg0: i32) -> (i32, i32) {
    %c0_i32 = arith.constant 0 : i32
    %c0_i32_0 = arith.constant 0 : i32
    %c0_i32_1 = arith.constant 0 : i32
    return %c0_i32, %c0_i32_0 : i32, i32
  }
  func.func @transform_7(%arg0: i32) -> (i32, i32) {
    %c0_i32 = arith.constant 0 : i32
    %c0_i32_0 = arith.constant 0 : i32
    %c0_i32_1 = arith.constant 0 : i32
    return %c0_i32, %c0_i32_0 : i32, i32
  }
  func.func @transform_8(%arg0: i32) -> (i32, i32) {
    %c0_i32 = arith.constant 0 : i32
    %c0_i32_0 = arith.constant 0 : i32
    %c0_i32_1 = arith.constant 0 : i32
    return %c0_i32, %c0_i32_0 : i32, i32
  }
  func.func @transform_9(%arg0: i32) -> (i32, i32) {
    %c0_i32 = arith.constant 0 : i32
    %c0_i32_0 = arith.constant 0 : i32
    %c0_i32_1 = arith.constant 0 : i32
    return %c0_i32, %c0_i32_0 : i32, i32
  }
  func.func @transform_10(%arg0: i32) -> (i32, i32) {
    %c0_i32 = arith.constant 0 : i32
    %c0_i32_0 = arith.constant 0 : i32
    %c0_i32_1 = arith.constant 0 : i32
    return %c0_i32, %c0_i32_0 : i32, i32
  }
  func.func @transform_11(%arg0: i32) -> (i32, i32) {
    %c0_i32 = arith.constant 0 : i32
    %c0_i32_0 = arith.constant 0 : i32
    %c0_i32_1 = arith.constant 0 : i32
    return %c0_i32, %c0_i32_0 : i32, i32
  }
  func.func @transform_12(%arg0: i32) -> (i32, i32) {
    %c0_i32 = arith.constant 0 : i32
    %c0_i32_0 = arith.constant 0 : i32
    %c0_i32_1 = arith.constant 0 : i32
    return %c0_i32, %c0_i32_0 : i32, i32
  }
  func.func @transform_13(%arg0: i32) -> (i32, i32) {
    %c0_i32 = arith.constant 0 : i32
    %c0_i32_0 = arith.constant 0 : i32
    %c0_i32_1 = arith.constant 0 : i32
    return %c0_i32, %c0_i32_0 : i32, i32
  }
  func.func @transform_14(%arg0: i32) -> (i32, i32) {
    %c0_i32 = arith.constant 0 : i32
    %c0_i32_0 = arith.constant 0 : i32
    %c0_i32_1 = arith.constant 0 : i32
    return %c0_i32, %c0_i32_0 : i32, i32
  }
  func.func @transform_15(%arg0: i32) -> (i32, i32) {
    %c0_i32 = arith.constant 0 : i32
    %c0_i32_0 = arith.constant 0 : i32
    %c0_i32_1 = arith.constant 0 : i32
    return %c0_i32, %c0_i32_0 : i32, i32
  }
  func.func @transform_16(%arg0: i32) -> (i32, i32) {
    %c0_i32 = arith.constant 0 : i32
    %c0_i32_0 = arith.constant 0 : i32
    return %arg0, %c0_i32 : i32, i32
  }
}

</mosaic_0001>

<bundles_post_ra>
// kernel: tpu_custom_call.1
= control target key start
LH: loop header
LB: loop body
LE: loop exit
PB: predicated region body
PF: predicated region fallthrough
CT: control target
= control target key end

     0   :  { %s5750_s0 = inlined_call_operand.vmem [shape: f32[16,8,32], index: 0, kind: input, shape index: {}]   ;;  %s5751_s1 = inlined_call_operand.vmem [shape: f32[16,16,32], index: 1, kind: input, shape index: {}]   ;;  %s5752_s2 = inlined_call_operand.hbm [shape: f32[16,8,16], index: 2, kind: input, shape index: {}]   ;;  %s5753_s3 = inlined_call_operand.vmem [shape: f32[16,16,8], index: 3, kind: input, shape index: {}]   ;;  %s5754_s4 = inlined_call_operand.hbm [shape: f32[32,128], index: 4, kind: input, shape index: {}]   ;;  %s5755_s5 = inlined_call_operand.hbm [shape: f32[32,128], index: 5, kind: input, shape index: {}]   ;;  %s5756_s6 = inlined_call_operand.vmem [shape: f32[1,128], index: 6, kind: input, shape index: {}]   ;;  %s5757_s7 = inlined_call_operand.hbm [shape: f32[128,128], index: 7, kind: input, shape index: {}]   ;;  %s5758_s8 = inlined_call_operand.vmem [shape: f32[1,128], index: 8, kind: input, shape index: {}]   ;;  %s5759_s9 = inlined_call_operand.hbm [shape: f32[128,128], index: 9, kind: input, shape index: {}]   ;;  %s5760_s10 = inlined_call_operand.hbm [shape: f32[128,128], index: 10, kind: input, shape index: {}]   ;;  %s5761_s11 = inlined_call_operand.vmem [shape: f32[1,128], index: 11, kind: input, shape index: {}]   ;;  %s5762_s12 = inlined_call_operand.hbm [shape: f32[128,128], index: 12, kind: input, shape index: {}]   ;;  %s5763_s13 = inlined_call_operand.vmem [shape: f32[1,128], index: 13, kind: input, shape index: {}]   ;;  %s5764_s14 = inlined_call_operand.hbm [shape: f32[128,128], index: 14, kind: input, shape index: {}]   ;;  %s5765_s15 = inlined_call_operand.vmem [shape: f32[1,128], index: 15, kind: input, shape index: {}]   ;;  %s5766_s16 = inlined_call_operand.hbm [shape: f32[16,128], index: 16, kind: output, shape index: {}]  }
   0x1   :  { %5772 = sst [smem:[#allocation23_spill]] %s5750_s0 }
   0x2   :  { %5773 = sst [smem:[#allocation24_spill]] %s5753_s3 }
   0x3   :  { %5774 = sst [smem:[#allocation25_spill]] %s5754_s4 }
   0x4   :  { %5775 = sst [smem:[#allocation26_spill]] %s5756_s6 }
   0x5   :  { %5776 = sst [smem:[#allocation27_spill]] %s5758_s8 }
   0x6   :  { %5777 = sst [smem:[#allocation28_spill]] %s5761_s11 }
   0x7   :  { %5778 = sst [smem:[#allocation29_spill]] %s5763_s13 }
   0x8   :  { %5779 = sst [smem:[#allocation30_spill]] %s5765_s15 }
   0x9   :  { %5780 = sst [smem:[#allocation31_spill]] %s5766_s16 }
   0xa   :  { %21 = vsyncpa [#allocation3], 0 }
   0xb   :  { %23 = vsyncpa [#allocation3 + $0x1], 0 }
   0xc   :  { %24 = vsyncpa [#allocation6], 0 }
   0xd   :  { %25 = vsyncpa [#allocation9], 0 }
   0xe   :  { %26 = vsyncpa [#allocation12], 0 }
   0xf   :  { %27 = vsyncpa [#allocation15], 0 }
  0x10   :  { %28 = vsyncpa [#allocation4], 0 }
  0x11   :  { %30 = vsyncpa [#allocation4 + $0x1], 0  ;;  %s4967_s21 = smov 0   ;;  %s4969_s22 = smov 0  }
  0x12   :  { %s4971_s23 = smov 0   ;;  %s4973_s24 = smov 0  }
  0x13 LB: > { %s4868_s25 = smov [#allocation5]   ;;  %s4988_s27 = sadd.s32 4294967295, %s4866_s24   ;;  %s4866_s24 = sphi %s4973_s24, %s5814_s24   ;;  %s4862_s23 = sphi %s4971_s23, %s5813_s23   ;;  %s4858_s22 = sphi %s4969_s22, %s5812_s22   ;;  %s4854_s21 = sphi %s4967_s21, %s5811_s21  }
  0x14   : > { %s435_s26 = sshll.u32 %s4868_s25, 4  ;;  %p3518_p0 = scmp.ge.s32.totalorder %s4866_s24, 1  ;;  %s4993_s26 = int_to_ptr.vmem [resolvable:$true] %s435_s26 }
  0x15   : > { %p5768_p1 = scmp.eq.s32.totalorder %s4988_s27, 0  ;;  %p423_p2 = scmp.lt.s32.totalorder %s4866_s24, 3 }
  0x16   : > { %s4869_s29 = smov [#allocation8]   ;;  %s4870_s17 = smov [#allocation11]  }
  0x17   : > { %p4995_p3 = pnand %p3518_p0, %p423_p2  ;;  %s464_s30 = sshll.u32 %s4869_s29, 4  ;;  %s5008_s30 = int_to_ptr.vmem [resolvable:$true] %s464_s30 }
  0x18   : > { %s493_s18 = sshll.u32 %s4870_s17, 4  ;;  %s5783_s4 = sld [smem:[#allocation25_spill]]  ;;  %s5010_s18 = int_to_ptr.vmem [resolvable:$true] %s493_s18 }
  0x19   : > { %s5781_s28 = scalar_select %p4995_p3, 1, 0 }
  0x1a   : > { %p4464_p5 = pneg %p4995_p3 }
  0x1c   : > { %p5004_p6 = pnand %p4464_p5, %p5768_p1 }
  0x1e   : > { %s4558_s25 = scalar_lea.hbm %s5783_s4, 512  ;;  %p5020_p8 = pneg %p5004_p6 }
  0x1f   : > { %p4559_p7 = scmp.ne.s32.totalorder %s5783_s4, %s4558_s25  ;;  %p4565_p11 = scmp.lt.u32.totalorder %s4558_s25, %s5783_s4 }
  0x21   : > { %p4561_p9 = pnand %p5020_p8, %p4559_p7 }
  0x23   : > { %p4562_p10 = pneg %p4561_p9 }
  0x25   : > { %p4567_p12 = pnand %p4565_p11, %p4562_p10 }
  0x27   : > { %4570 = shalt.err (!%p4567_p12)
}
  0x28   : > { %s4571_s15 = scalar_lea.vmem %s4993_s26, 512  ;;  %p4579_p5 = scmp.lt.s32.totalorder %s4993_s26, %s4993_s26 }
  0x29   : > { %p4572_p13 = scmp.ne.s32.totalorder %s4993_s26, %s4571_s15  ;;  %p4580_p4 = scmp.lt.s32.totalorder %s4571_s15, %s4571_s15 }
  0x2b   : > { %p4574_p0 = pnand %p4572_p13, %p5020_p8  ;;  %p4581_p7 = por %p4580_p4, %p4579_p5 }
  0x2d   : > { %p4575_p2 = pneg %p4574_p0 }
  0x2f   : > { %p4582_p9 = pnand %p4581_p7, %p4575_p2 }
  0x31   : > { %4585 = shalt.err (!%p4582_p9)
}
  0x32   : > { %s5770_s16 = smov 128   ;;  %s4872_s13 = smov 8  }
  0x33   : > { %4467 = dma.hbm_to_vmem [thread:$0]  (!%p5004_p6), %s5783_s4, 512, %s4993_s26, [#allocation6], %s5770_s16, %s5770_s16, %s4872_s13  }
  0x34   : > { %s4586_s15 = scalar_lea.hbm %s5757_s7, 2048 }
  0x35   : > { %p4587_p4 = scmp.ne.s32.totalorder %s5757_s7, %s4586_s15  ;;  %p4593_p12 = scmp.lt.u32.totalorder %s4586_s15, %s5757_s7 }
  0x37   : > { %p4589_p10 = pnand %p4587_p4, %p5020_p8 }
  0x39   : > { %p4590_p11 = pneg %p4589_p10 }
  0x3b   : > { %p4595_p13 = pnand %p4593_p12, %p4590_p11 }
  0x3d   : > { %4598 = shalt.err (!%p4595_p13)
}
  0x3e   : > { %s4599_s26 = scalar_lea.vmem %s5008_s30, 2048  ;;  %p4607_p7 = scmp.lt.s32.totalorder %s5008_s30, %s5008_s30 }
  0x3f   : > { %p4600_p0 = scmp.ne.s32.totalorder %s5008_s30, %s4599_s26  ;;  %p4608_p9 = scmp.lt.s32.totalorder %s4599_s26, %s4599_s26 }
  0x41   : > { %p4602_p2 = pnand %p4600_p0, %p5020_p8  ;;  %p4609_p4 = por %p4608_p9, %p4607_p7 }
  0x43   : > { %p4603_p5 = pneg %p4602_p2 }
  0x45   : > { %p4610_p10 = pnand %p4609_p4, %p4603_p5 }
  0x47   : > { %4613 = shalt.err (!%p4610_p10)
}
  0x48   : > { %4473 = dma.hbm_to_vmem [thread:$0]  (!%p5004_p6), %s5757_s7, 2048, %s5008_s30, [#allocation9], %s5770_s16, %s5770_s16, %s4872_s13  }
  0x49   : > { %s4614_s19 = scalar_lea.hbm %s5760_s10, 2048 }
  0x4a   : > { %p4615_p11 = scmp.ne.s32.totalorder %s5760_s10, %s4614_s19  ;;  %p4621_p0 = scmp.lt.u32.totalorder %s4614_s19, %s5760_s10 }
  0x4c   : > { %p4617_p12 = pnand %p4615_p11, %p5020_p8 }
  0x4e   : > { %p4618_p13 = pneg %p4617_p12 }
  0x50   : > { %p4623_p2 = pnand %p4621_p0, %p4618_p13 }
  0x52   : > { %4626 = shalt.err (!%p4623_p2)
}
  0x53   : > { %s4627_s30 = scalar_lea.vmem %s5010_s18, 2048  ;;  %p4635_p4 = scmp.lt.s32.totalorder %s5010_s18, %s5010_s18 }
  0x54   : > { %p4628_p5 = scmp.ne.s32.totalorder %s5010_s18, %s4627_s30  ;;  %p4636_p10 = scmp.lt.s32.totalorder %s4627_s30, %s4627_s30 }
  0x56   : > { %p4630_p7 = pnand %p4628_p5, %p5020_p8  ;;  %p4637_p11 = por %p4636_p10, %p4635_p4 }
  0x58   : > { %p4631_p9 = pneg %p4630_p7 }
  0x5a   : > { %p4638_p12 = pnand %p4637_p11, %p4631_p9 }
  0x5c   : > { %4641 = shalt.err (!%p4638_p12)
}
  0x5d   : > { %4479 = dma.hbm_to_vmem [thread:$0]  (!%p5004_p6), %s5760_s10, 2048, %s5010_s18, [#allocation12], %s5770_s16, %s5770_s16, %s4872_s13  }
  0x5e   : > { %s4873_s6 = smov [#allocation7]   ;;  %s4874_s11 = smov [#allocation10]  }
  0x5f   : > { %s448_s8 = sshll.u32 %s4873_s6, 4  ;;  %s480_s19 = sshll.u32 %s4874_s11, 4  ;;  %s449_s8 = int_to_ptr.vmem [resolvable:$true] %s448_s8  ;;  %s481_s19 = int_to_ptr.vmem [resolvable:$true] %s480_s19 }
  0x60   : > { %s4642_s17 = scalar_lea.hbm %s5755_s5, 512 }
  0x61   : > { %p4643_p13 = scmp.ne.s32.totalorder %s5755_s5, %s4642_s17  ;;  %p4649_p5 = scmp.lt.u32.totalorder %s4642_s17, %s5755_s5 }
  0x63   : > { %p4645_p0 = pnand %p4643_p13, %p5020_p8 }
  0x65   : > { %p4646_p2 = pneg %p4645_p0 }
  0x67   : > { %p4651_p7 = pnand %p4649_p5, %p4646_p2 }
  0x69   : > { %4654 = shalt.err (!%p4651_p7)
}
  0x6a   : > { %s4655_s18 = scalar_lea.vmem %s449_s8, 512  ;;  %p4663_p11 = scmp.lt.s32.totalorder %s449_s8, %s449_s8 }
  0x6b   : > { %p4656_p9 = scmp.ne.s32.totalorder %s449_s8, %s4655_s18  ;;  %p4664_p12 = scmp.lt.s32.totalorder %s4655_s18, %s4655_s18 }
  0x6d   : > { %p4658_p4 = pnand %p4656_p9, %p5020_p8  ;;  %p4665_p1 = por %p4664_p12, %p4663_p11 }
  0x6f   : > { %p4659_p10 = pneg %p4658_p4 }
  0x71   : > { %p4666_p3 = pnand %p4665_p1, %p4659_p10 }
  0x73   : > { %4669 = shalt.err (!%p4666_p3)
}
  0x74   : > { %4470 = dma.hbm_to_vmem [thread:$0]  (!%p5004_p6), %s5755_s5, 512, %s449_s8, [#allocation6], %s5770_s16, %s5770_s16, %s4872_s13  }
  0x75   : > { %s4670_s20 = scalar_lea.hbm %s5759_s9, 2048 }
  0x76   : > { %p4671_p1 = scmp.ne.s32.totalorder %s5759_s9, %s4670_s20  ;;  %p4677_p0 = scmp.lt.u32.totalorder %s4670_s20, %s5759_s9 }
  0x78   : > { %p4673_p3 = pnand %p4671_p1, %p5020_p8 }
  0x7a   : > { %p4674_p13 = pneg %p4673_p3 }
  0x7c   : > { %p4679_p2 = pnand %p4677_p0, %p4674_p13 }
  0x7e   : > { %4682 = shalt.err (!%p4679_p2)
}
  0x7f   : > { %s4683_s26 = scalar_lea.vmem %s481_s19, 2048  ;;  %p4691_p4 = scmp.lt.s32.totalorder %s481_s19, %s481_s19 }
  0x80   : > { %p4684_p5 = scmp.ne.s32.totalorder %s481_s19, %s4683_s26  ;;  %p4692_p10 = scmp.lt.s32.totalorder %s4683_s26, %s4683_s26 }
  0x82   : > { %p4686_p7 = pnand %p4684_p5, %p5020_p8  ;;  %p4693_p11 = por %p4692_p10, %p4691_p4 }
  0x84   : > { %p4687_p9 = pneg %p4686_p7 }
  0x86   : > { %p4694_p12 = pnand %p4693_p11, %p4687_p9 }
  0x88   : > { %4697 = shalt.err (!%p4694_p12)
}
  0x89   : > { %4476 = dma.hbm_to_vmem [thread:$0]  (!%p5004_p6), %s5759_s9, 2048, %s481_s19, [#allocation9], %s5770_s16, %s5770_s16, %s4872_s13  }
  0x8a   : > { %s4875_s4 = smov [#allocation13]   ;;  %s4876_s6 = smov [#allocation14]  }
  0x8b   : > { %s509_s3 = sshll.u32 %s4875_s4, 4  ;;  %s525_s11 = sshll.u32 %s4876_s6, 4  ;;  %s510_s3 = int_to_ptr.vmem [resolvable:$true] %s509_s3  ;;  %s526_s11 = int_to_ptr.vmem [resolvable:$true] %s525_s11 }
  0x8c   : > { %s4698_s17 = scalar_lea.hbm %s5762_s12, 2048 }
  0x8d   : > { %p4699_p1 = scmp.ne.s32.totalorder %s5762_s12, %s4698_s17  ;;  %p4705_p0 = scmp.lt.u32.totalorder %s4698_s17, %s5762_s12 }
  0x8f   : > { %p4701_p3 = pnand %p4699_p1, %p5020_p8 }
  0x91   : > { %p4702_p13 = pneg %p4701_p3 }
  0x93   : > { %p4707_p2 = pnand %p4705_p0, %p4702_p13 }
  0x95   : > { %4710 = shalt.err (!%p4707_p2)
}
  0x96   : > { %s4711_s19 = scalar_lea.vmem %s510_s3, 2048  ;;  %p4719_p4 = scmp.lt.s32.totalorder %s510_s3, %s510_s3 }
  0x97   : > { %p4712_p5 = scmp.ne.s32.totalorder %s510_s3, %s4711_s19  ;;  %p4720_p10 = scmp.lt.s32.totalorder %s4711_s19, %s4711_s19 }
  0x99   : > { %p4714_p7 = pnand %p4712_p5, %p5020_p8  ;;  %p4721_p11 = por %p4720_p10, %p4719_p4 }
  0x9b   : > { %p4715_p9 = pneg %p4714_p7 }
  0x9d   : > { %p4722_p12 = pnand %p4721_p11, %p4715_p9 }
  0x9f   : > { %4725 = shalt.err (!%p4722_p12)
}
  0xa0   : > { %4482 = dma.hbm_to_vmem [thread:$0]  (!%p5004_p6), %s5762_s12, 2048, %s510_s3, [#allocation12], %s5770_s16, %s5770_s16, %s4872_s13  }
  0xa1   : > { %s4726_s25 = scalar_lea.hbm %s5764_s14, 2048 }
  0xa2   : > { %p4727_p1 = scmp.ne.s32.totalorder %s5764_s14, %s4726_s25  ;;  %p4733_p0 = scmp.lt.u32.totalorder %s4726_s25, %s5764_s14 }
  0xa4   : > { %p4729_p3 = pnand %p4727_p1, %p5020_p8 }
  0xa6   : > { %p4730_p13 = pneg %p4729_p3 }
  0xa8   : > { %p4735_p2 = pnand %p4733_p0, %p4730_p13 }
  0xaa   : > { %4738 = shalt.err (!%p4735_p2)
}
  0xab   : > { %s4739_s8 = scalar_lea.vmem %s526_s11, 2048  ;;  %p4747_p4 = scmp.lt.s32.totalorder %s526_s11, %s526_s11 }
  0xac   : > { %p4740_p5 = scmp.ne.s32.totalorder %s526_s11, %s4739_s8  ;;  %p4748_p10 = scmp.lt.s32.totalorder %s4739_s8, %s4739_s8 }
  0xae   : > { %p4742_p7 = pnand %p4740_p5, %p5020_p8  ;;  %p4749_p11 = por %p4748_p10, %p4747_p4 }
  0xb0   : > { %p4743_p9 = pneg %p4742_p7 }
  0xb2   : > { %p4750_p12 = pnand %p4749_p11, %p4743_p9 }
  0xb4   : > { %4753 = shalt.err (!%p4750_p12)
}
  0xb5   : > { %4485 = dma.hbm_to_vmem [thread:$0]  (!%p5004_p6), %s5764_s14, 2048, %s526_s11, [#allocation15], %s5770_s16, %s5770_s16, %s4872_s13  }
  0xb6   : > { %s3517_s0 = sadd.s32 4294967294, %s4866_s24   ;;  %s5182_s29 = sadd.s32 1, %s4866_s24  }
  0xb7   : > { %s95_s18 = sadd.s32 1, %s4862_s23  ;;  %s92_s4 = ssub.s32 %s4866_s24, %s5182_s29 }
  0xb8   : > { %p102_p8 = scmp.ne.s32.totalorder %s4862_s23, %s4858_s22  ;;  %p93_p1 = scmp.eq.s32.totalorder %s92_s4, 0 }
  0xb9   : > { %p103_p3 = scmp.eq.s32.totalorder %s4866_s24, 0  ;;  %p108_p13 = scmp.ne.s32.totalorder %s4858_s22, %s4854_s21 }
  0xba   : > { %p410_p0 = scmp.eq.s32.totalorder %s4988_s27, 1  ;;  %p5785_p5 = scmp.eq.s32.totalorder %s4988_s27, 0 }
  0xbb   : > { %s5194_s6 = scalar_select %p93_p1, %s4862_s23, %s95_s18  }
  0xbc   : > { %p104_p2 = por %p103_p3, %p102_p8  ;;  %p5198_p7 = por %p5785_p5, %p108_p13 }
  0xbd   : > { %p5202_p6 = por %p410_p0, %p102_p8  ;;  %p416_p9 = scmp.eq.s32.totalorder %s3517_s0, 1 }
  0xbe   : > { %p4501_p4 = scmp.lt.s32.totalorder %s4866_s24, 2  ;;  %s561_s25 = sand.u32 1, %s4862_s23  }
  0xbf   : > { %s5787_s11 = scalar_select %p5202_p6, 1, 0 }
  0xc0   : > { %p5208_p10 = por %p416_p9, %p108_p13  ;;  %s3527_s15 = sshll.u32 %s561_s25, 6 }
  0xc1   : > { %s3629_s30 = sshll.u32 %s4866_s24, 10  ;;  %s565_s19 = scalar_lea.vmem [#allocation2], %s3527_s15 }
  0xc2   : > { %s5788_s17 = scalar_select %p5208_p10, 1, 0 }
  0xc3   : > { %s5216_s3 = scalar_lea.hbm %s5752_s2, %s3629_s30  ;;  %s572_s18 = sshll.u32 %s565_s19, 4  ;;  %s5222_s18 = int_to_ptr.vmem [resolvable:$true] %s572_s18 }
  0xc4   : > { %p5218_p11 = pnand %p4501_p4, %p104_p2  ;;  %s5224_s4 = scalar_lea.sflag [#allocation3], %s561_s25 }
  0xc5   : > { %s4754_s16 = scalar_lea.hbm %s5216_s3, 1024  ;;  %s4759_s26 = scalar_lea.hbm %s5752_s2, 2048 }
  0xc6   : > { %p4755_p12 = scmp.ne.s32.totalorder %s5216_s3, %s4754_s16  ;;  %p4756_p8 = pneg %p5218_p11 }
  0xc7   : > { %p4760_p13 = scmp.lt.u32.totalorder %s5216_s3, %s5752_s2  ;;  %p4761_p0 = scmp.lt.u32.totalorder %s4759_s26, %s4754_s16 }
  0xc8   : > { %p4757_p1 = pnand %p4756_p8, %p4755_p12  ;;  %p4763_p5 = scmp.lt.u32.totalorder %s4754_s16, %s5216_s3 }
  0xc9   : > { %p4762_p2 = por %p4761_p0, %p4760_p13 }
  0xca   : > { %p4758_p3 = pneg %p4757_p1 }
  0xcb   : > { %p4764_p9 = por %p4763_p5, %p4762_p2 }
  0xcd   : > { %p4765_p4 = pnand %p4764_p9, %p4758_p3 }
  0xcf   : > { %4768 = shalt.err (!%p4765_p4)
}
  0xd0   : > { %s4769_s25 = scalar_lea.vmem %s5222_s18, 1024  ;;  %s4877_s15 = smov [#allocation2]  }
  0xd1   : > { %p4770_p12 = scmp.ne.s32.totalorder %s5222_s18, %s4769_s25  ;;  %s4774_s30 = sshll.u32 %s4877_s15, 4  ;;  %s4775_s30 = int_to_ptr.vmem [resolvable:$false] %s4774_s30 }
  0xd2   : > { %s4776_s8 = scalar_lea.vmem %s4775_s30, 2048  ;;  %p4777_p6 = scmp.lt.s32.totalorder %s5222_s18, %s4775_s30 }
  0xd3   : > { %p4772_p1 = pnand %p4770_p12, %p4756_p8  ;;  %p4778_p13 = scmp.lt.s32.totalorder %s4776_s8, %s4769_s25 }
  0xd5   : > { %p4773_p10 = pneg %p4772_p1  ;;  %p4779_p0 = por %p4778_p13, %p4777_p6 }
  0xd7   : > { %p4780_p2 = pnand %p4779_p0, %p4773_p10 }
  0xd9   : > { %4783 = shalt.err (!%p4780_p2)
}
  0xda   : > { %s5790_s16 = smov 128   ;;  %p5791_p8 = scmp.ne.s32.totalorder %s5781_s28, 0 }
  0xdb   : > { %4489 = dma.hbm_to_vmem [thread:$0]  (!%p5218_p11), %s5216_s3, 1024, %s5222_s18, %s5224_s4, %s5790_s16, %s5790_s16, %s4872_s13  }
  0xdc   : > { %594 = sbr.rel (%p5791_p8) target bundleno = 1987 (0x7c3), region = 84  ;;  %s5258_s26 = sand.u32 (!%p5791_p8), 1, %s4858_s22  }
  0xdd   : > { %s3531_s19 = sshll.u32 (!%p5791_p8), %s5258_s26, 6  ;;  %s597_s25 = scalar_lea.sflag (!%p5791_p8), [#allocation3], %s5258_s26 }
  0xde   : > { %s5262_s15 = scalar_lea.vmem (!%p5791_p8), [#allocation2], %s3531_s19 }
  0xe3   : > { %4829 = dma.done.wait (%p5198_p7), %s597_s25, 1024  }
  0xe4   : > { %4831 = vsyncadd (%p5198_p7), %s597_s25, 4294966272  ;;  %p5792_p6 = scmp.eq.s32.totalorder %s4988_s27, 0 }
  0xe6   : > { %4833 = dma.done.wait (%p5792_p6), [#allocation6], 1024   ;;  %p5793_p10 = pmov %p5792_p6 }
  0xe7   : > { %p5794_p11 = pmov %p5792_p6 }
  0xe8   : > { %4835 = vsyncadd (%p5793_p10), [#allocation6], 4294966272 }
  0xe9   : > { %4837 = dma.done.wait (%p5794_p11), [#allocation9], 4096   ;;  %p5795_p3 = pmov %p5792_p6 }
  0xeb   : > { %4839 = vsyncadd (%p5795_p3), [#allocation9], 4294963200  ;;  %p5796_p5 = pmov %p5795_p3 }
  0xec   : > { %p5797_p9 = pmov %p5795_p3 }
  0xed   : > { %4841 = dma.done.wait (%p5796_p5), [#allocation12], 4096  }
  0xee   : > { %4843 = vsyncadd (%p5797_p9), [#allocation12], 4294963200  ;;  %p5798_p7 = pmov %p5795_p3 }
  0xef   : > { %p5799_p4 = pmov %p5795_p3 }
  0xf0   : > { %4845 = dma.done.wait (%p5798_p7), [#allocation15], 2048  }
  0xf1   : > { %4847 = vsyncadd (%p5799_p4), [#allocation15], 4294965248  ;;  %s3540_s28 = sshll.u32 %s4988_s27, 3  ;;  %v4878_v0 = vmov 0.0|0.0   ;;  %vm4879_vm0 = vmmov 0   ;;  %v4880_v1 = vmov 0.0  }
  0xf2   : > { %4236 = vmatprep.subr.bf16.mxu0 %v4878_v0  ;;  %p695_p12 = scmp.lt.s32.totalorder %s3540_s28, 15  ;;  %4239 = vmatprep.subr.bf16.mxu1 %v4878_v0  ;;  %v739_v11 = vld [vmem:[%s5262_s15] sm:$0xff]  ;;  %vm763_vm1 = vcmask 130048   ;;  %v740_v14 = vld [vmem:[%s5262_s15 + $0x8] sm:$0xff]  ;;  %v741_v20 = vld [vmem:[%s5262_s15 + $0x10] sm:$0xff]  ;;  %s5800_s8 = sld [smem:[#allocation23_spill]] }
  0xf3   : > { %3848 = vmatprep.mubr.msk.f32.mxu0 %vm4879_vm0, %v4880_v1  ;;  %3855 = vmatprep.mubr.msk.f32.mxu1 %vm4879_vm0, %v4880_v1  ;;  %v742_v22 = vld [vmem:[%s5262_s15 + $0x18] sm:$0xff]  ;;  %v743_v28 = vld [vmem:[%s5262_s15 + $0x20] sm:$0xff]  ;;  %v744_v30 = vld [vmem:[%s5262_s15 + $0x28] sm:$0xff]  ;;  %s5801_s20 = sld [smem:[#allocation24_spill]]  ;;  %vm1348_vm2 = vcmask 64512   ;;  %vm2005_vm3 = vcmask 261120  }
  0xf4   : > { %s5816_s28 = smov (!%p695_p12, %s3540_s28), 15  ;;  %v745_v33 = vld [vmem:[%s5262_s15 + $0x30] sm:$0xff]  ;;  %v746_v35 = vld [vmem:[%s5262_s15 + $0x38] sm:$0xff]  ;;  %v2001_v51 = vld [vmem:[#allocation7] sm:$0xff]  ;;  %s5803_s4 = sld [smem:[#allocation27_spill]]  ;;  %vm2951_vm4 = vcmask 1041409  }
  0xf5   : > { %s3630_s13 = sshll.u32 %s5816_s28, 4  ;;  %s3541_s0 = sshll.u32 %s5816_s28, 3  ;;  %v2002_v52 = vld [vmem:[#allocation7 + $0x8] sm:$0xff]  ;;  %v2003_v58 = vld [vmem:[#allocation7 + $0x10] sm:$0xff]  ;;  %v2004_v59 = vld [vmem:[#allocation7 + $0x18] sm:$0xff]  ;;  %vm2953_vm5 = vcmask 1042434  }
  0xf6   : > { %s5299_s18 = scalar_lea.vmem %s5751_s1, %s3630_s13  ;;  %v4260_v57 = vpack.c.bf16 %v2002_v52, %v2001_v51  ;;  %v4264_v63 = vpack.c.bf16 %v2004_v59, %v2003_v58  ;;  %vm2955_vm6 = vcmask 1043459   ;;  %vm2957_vm7 = vcmask 1044484   ;;  %s5806_s28 = sld [smem:[#allocation30_spill]] }
  0xf7   : > { %v5302_v2 = vld [vmem:[%s5299_s18] sm:$0xff]  ;;  %v5305_v3 = vld [vmem:[%s5299_s18 + $0x8] sm:$0xff]  ;;  %v5308_v4 = vld [vmem:[%s5299_s18 + $0x10] sm:$0xff]  ;;  %vm2959_vm8 = vcmask 1045509   ;;  %vm2961_vm9 = vcmask 1046534   ;;  %vm2963_vm10 = vcmask 1047559  }
  0xf8   : > { %v4237_v5 = vpack.c.bf16 %v5305_v3, %v5302_v2  ;;  %v5313_v6 = vld [vmem:[%s5299_s18 + $0x18] sm:$0xff]  ;;  %v5316_v7 = vld [vmem:[%s5299_s18 + $0x20] sm:$0xff]  ;;  %v5321_v9 = vld [vmem:[%s5299_s18 + $0x28] sm:$0xff]  ;;  %s5384_s16 = scalar_lea.vmem %s5800_s8, %s3541_s0  ;;  %s3331_s25 = scalar_lea.sflag [#allocation4], %s5258_s26 }
  0xf9   : > { %v4240_v8 = vpack.c.bf16 %v5313_v6, %v5308_v4  ;;  %v5324_v10 = vld [vmem:[%s5299_s18 + $0x30] sm:$0xff]  ;;  %v4243_v12 = vpack.c.bf16 %v5321_v9, %v5316_v7  ;;  %v5330_v13 = vld [vmem:[%s5299_s18 + $0x38] sm:$0xff]  ;;  %v5337_v16 = vld [vmem:[%s5299_s18 + $0x40] sm:$0xff]  ;;  %s5404_s3 = scalar_lea.vmem %s5801_s20, %s3630_s13  ;;  %s5802_s13 = sld [smem:[#allocation26_spill]] }
  0xfa   : > { %4238 = vmatpush3.bf16.msra.mxu0 %v4237_v5  ;;  %v4246_v15 = vpack.c.bf16 %v5330_v13, %v5324_v10  ;;  %v5340_v17 = vld [vmem:[%s5299_s18 + $0x48] sm:$0xff]  ;;  %v5344_v18 = vld [vmem:[%s5299_s18 + $0x50] sm:$0xff]  ;;  %v5347_v19 = vld [vmem:[%s5299_s18 + $0x58] sm:$0xff]  ;;  %s5805_s20 = sld [smem:[#allocation29_spill]]  ;;  %p5808_p13 = scmp.ne.s32.totalorder %s5787_s11, 0 }
  0xfb   : > { %4241 = vmatpush3.bf16.msra.mxu1 %v4240_v8  ;;  %4242 = vmatprep.subr.bf16.mxu0 %v4878_v0  ;;  %v4249_v21 = vpack.c.bf16 %v5340_v17, %v5337_v16  ;;  %v4252_v23 = vpack.c.bf16 %v5347_v19, %v5344_v18  ;;  %v5360_v24 = vld [vmem:[%s5299_s18 + $0x60] sm:$0xff]  ;;  %v5363_v25 = vld [vmem:[%s5299_s18 + $0x68] sm:$0xff]  ;;  %v5370_v26 = vld [vmem:[%s5299_s18 + $0x70] sm:$0xff] }
  0xfc   : > { %4245 = vmatprep.subr.bf16.mxu1 %v4878_v0  ;;  %v5373_v27 = vld [vmem:[%s5299_s18 + $0x78] sm:$0xff]  ;;  %v4255_v29 = vpack.c.bf16 %v5363_v25, %v5360_v24  ;;  %v5397_v32 = vld [vmem:[%s5384_s16] sm:$0xff]  ;;  %v5409_v34 = vld [vmem:[%s5384_s16 + $0x8] sm:$0xff]  ;;  %s3626_s18 = sshll.u32 %s4988_s27, 7  ;;  %s4881_s27 = smov [#allocation16]  }
  0xfd   : > { %3849 = vmatmul.mubr.msk.f32.vlgmr.msra.gmra.mrb[0].mxu0 %vm763_vm1, %v739_v11  ;;  %v4258_v31 = vpack.c.bf16 %v5373_v27, %v5370_v26  ;;  %v747_v36 = vld [vmem:[%s5404_s3] sm:$0xff]  ;;  %v749_v37 = vld [vmem:[%s5404_s3 + $0x10] sm:$0xff]  ;;  %v748_v39 = vld [vmem:[%s5404_s3 + $0x8] sm:$0xff] }
  0xfe   : > { %4244 = vmatpush3.bf16.msra.mxu0 %v4243_v12  ;;  %3856 = vmatmul.mubr.msk.f32.vlgmr.msra.gmra.mrb[0].mxu1 %vm763_vm1, %v740_v14  ;;  %v5422_v38 = vld [vmem:[%s5384_s16 + $0x10] sm:$0xff]  ;;  %v5428_v40 = vld [vmem:[%s5384_s16 + $0x18] sm:$0xff]  ;;  %v751_v42 = vld [vmem:[%s5404_s3 + $0x20] sm:$0xff] }
  0xff   : > { %3862 = vmatprep.mubr.msk.f32.mxu0 %vm4879_vm0, %v4880_v1  ;;  %4247 = vmatpush3.bf16.msra.mxu1 %v4246_v15  ;;  %v750_v41 = vld [vmem:[%s5404_s3 + $0x18] sm:$0xff]  ;;  %v753_v43 = vld [vmem:[%s5404_s3 + $0x30] sm:$0xff]  ;;  %v5440_v44 = vld [vmem:[%s5384_s16 + $0x20] sm:$0xff] }
 0x100   : > { %4248 = vmatprep.subr.bf16.mxu0 %v4878_v0  ;;  %3869 = vmatprep.mubr.msk.f32.mxu1 %vm4879_vm0, %v4880_v1  ;;  %v752_v45 = vld [vmem:[%s5404_s3 + $0x28] sm:$0xff]  ;;  %v754_v47 = vld [vmem:[%s5404_s3 + $0x38] sm:$0xff]  ;;  %v755_v48 = vld [vmem:[%s5404_s3 + $0x40] sm:$0xff] }
 0x101   : > { %3863 = vmatmul.mubr.msk.f32.vlgmr.msra.gmra.mrb[2].mxu0 %vm763_vm1, %v741_v20  ;;  %4251 = vmatprep.subr.bf16.mxu1 %v4878_v0  ;;  %v5446_v46 = vld [vmem:[%s5384_s16 + $0x28] sm:$0xff]  ;;  %v757_v49 = vld [vmem:[%s5404_s3 + $0x50] sm:$0xff]  ;;  %v5464_v54 = vld [vmem:[%s5384_s16 + $0x38] sm:$0xff] }
 0x102   : > { %4250 = vmatpush3.bf16.msra.mxu0 %v4249_v21  ;;  %3870 = vmatmul.mubr.msk.f32.vlgmr.msra.gmra.mrb[2].mxu1 %vm763_vm1, %v742_v22  ;;  %v5458_v50 = vld [vmem:[%s5384_s16 + $0x30] sm:$0xff]  ;;  %v756_v53 = vld [vmem:[%s5404_s3 + $0x48] sm:$0xff]  ;;  %v758_v55 = vld [vmem:[%s5404_s3 + $0x58] sm:$0xff]  ;;  %s5804_s16 = sld [smem:[#allocation28_spill]] }
 0x103   : > { %3876 = vmatprep.mubr.msk.f32.mxu0 %vm4879_vm0, %v4880_v1  ;;  %4253 = vmatpush3.bf16.msra.mxu1 %v4252_v23  ;;  %v759_v56 = vld [vmem:[%s5404_s3 + $0x60] sm:$0xff]  ;;  %v761_v60 = vld [vmem:[%s5404_s3 + $0x70] sm:$0xff]  ;;  %v760_v61 = vld [vmem:[%s5404_s3 + $0x68] sm:$0xff] }
 0x104   : > { %4254 = vmatprep.subr.bf16.mxu0 %v4878_v0  ;;  %3883 = vmatprep.mubr.msk.f32.mxu1 %vm4879_vm0, %v4880_v1  ;;  %v762_v62 = vld [vmem:[%s5404_s3 + $0x78] sm:$0xff]  ;;  %v1997_v5 = vld [vmem:[#allocation5] sm:$0xff]  ;;  %v1998_v8 = vld [vmem:[#allocation5 + $0x8] sm:$0xff]  ;;  %s4788_s3 = sshll.u32 %s4881_s27, 4  ;;  %s4789_s3 = int_to_ptr.vmem [resolvable:$false] %s4788_s3 }
 0x105   : > { %3877 = vmatmul.mubr.msk.f32.vlgmr.msra.gmra.mrb[4].mxu0 %vm763_vm1, %v743_v28  ;;  %4257 = vmatprep.subr.bf16.mxu1 %v4878_v0  ;;  %v4268_v11 = vpack.c.bf16 %v1998_v8, %v1997_v5  ;;  %v1999_v12 = vld [vmem:[#allocation5 + $0x10] sm:$0xff]  ;;  %v2000_v14 = vld [vmem:[#allocation5 + $0x18] sm:$0xff]  ;;  %v2579_v23 = vld [vmem:[#allocation8 + $0x20] sm:$0xff]  ;;  %s4790_s15 = scalar_lea.vmem %s4789_s3, 256 }
 0x106   : > { %4256 = vmatpush3.bf16.msra.mxu0 %v4255_v29  ;;  %3884 = vmatmul.mubr.msk.f32.vlgmr.msra.gmra.mrb[4].mxu1 %vm763_vm1, %v744_v30  ;;  %v4272_v15 = vpack.c.bf16 %v2000_v14, %v1999_v12  ;;  %v2577_v20 = vld [vmem:[#allocation8 + $0x10] sm:$0xff]  ;;  %v2587_v8 = vld [vmem:[#allocation8 + $0x60] sm:$0xff] }
 0x107   : > { %3890 = vmatprep.mubr.msk.f32.mxu0 %vm4879_vm0, %v4880_v1  ;;  %4259 = vmatpush3.bf16.msra.mxu1 %v4258_v31 }
 0x108   : > { %3900 = vmatprep.subr.mxu0 %v5397_v32  ;;  %3897 = vmatprep.mubr.msk.f32.mxu1 %vm4879_vm0, %v4880_v1 }
 0x109   : > { %3891 = vmatmul.mubr.msk.f32.vlgmr.msra.gmra.mrb[6].mxu0 %vm763_vm1, %v745_v33  ;;  %3905 = vmatprep.subr.mxu1 %v5409_v34 }
 0x10a   : > { %3901 = vmatpush3.msra.mxu0 %v5397_v32  ;;  %3898 = vmatmul.mubr.msk.f32.vlgmr.msra.gmra.mrb[6].mxu1 %vm763_vm1, %v746_v35 }
 0x10b   : > { %3902 = vmatprep.mubr.msk.f32.mxu0 %vm1348_vm2, %v747_v36  ;;  %3906 = vmatpush3.msra.mxu1 %v5409_v34 }
 0x10c   : > { %3907 = vmatprep.mubr.msk.f32.mxu1 %vm1348_vm2, %v749_v37  ;;  %3910 = vmatprep.subr.mxu0 %v5422_v38 }
 0x10d   : > { %3903 = vmatmul.mubr.msk.f32.vlgmr.msra.gmra.mrb[8].mxu0 %vm1348_vm2, %v748_v39  ;;  %3915 = vmatprep.subr.mxu1 %v5428_v40 }
 0x10e   : > { %3908 = vmatmul.mubr.msk.f32.vlgmr.msra.gmra.mrb[8].mxu1 %vm1348_vm2, %v750_v41  ;;  %3911 = vmatpush3.msra.mxu0 %v5422_v38 }
 0x10f   : > { %3912 = vmatprep.mubr.msk.f32.mxu0 %vm1348_vm2, %v751_v42  ;;  %3916 = vmatpush3.msra.mxu1 %v5428_v40 }
 0x110   : > { %3917 = vmatprep.mubr.msk.f32.mxu1 %vm1348_vm2, %v753_v43  ;;  %3920 = vmatprep.subr.mxu0 %v5440_v44 }
 0x111   : > { %3913 = vmatmul.mubr.msk.f32.vlgmr.msra.gmra.mrb[10].mxu0 %vm1348_vm2, %v752_v45  ;;  %3925 = vmatprep.subr.mxu1 %v5446_v46 }
 0x112   : > { %3918 = vmatmul.mubr.msk.f32.vlgmr.msra.gmra.mrb[10].mxu1 %vm1348_vm2, %v754_v47  ;;  %3921 = vmatpush3.msra.mxu0 %v5440_v44 }
 0x113   : > { %3922 = vmatprep.mubr.msk.f32.mxu0 %vm1348_vm2, %v755_v48  ;;  %3926 = vmatpush3.msra.mxu1 %v5446_v46 }
 0x114   : > { %3927 = vmatprep.mubr.msk.f32.mxu1 %vm1348_vm2, %v757_v49  ;;  %3930 = vmatprep.subr.mxu0 %v5458_v50 }
 0x115   : > { %3923 = vmatmul.mubr.msk.f32.vlgmr.msra.gmra.mrb[12].mxu0 %vm1348_vm2, %v756_v53  ;;  %3935 = vmatprep.subr.mxu1 %v5464_v54 }
 0x116   : > { %3928 = vmatmul.mubr.msk.f32.vlgmr.msra.gmra.mrb[12].mxu1 %vm1348_vm2, %v758_v55  ;;  %3931 = vmatpush3.msra.mxu0 %v5458_v50 }
 0x117   : > { %3932 = vmatprep.mubr.msk.f32.mxu0 %vm1348_vm2, %v759_v56  ;;  %3936 = vmatpush3.msra.mxu1 %v5464_v54 }
 0x118   : > { %3937 = vmatprep.mubr.msk.f32.mxu1 %vm1348_vm2, %v761_v60  ;;  %4261 = vmatprep.subr.bf16.mxu0 %v4260_v57 }
 0x119   : > { %3933 = vmatmul.mubr.msk.f32.vlgmr.msra.gmra.mrb[14].mxu0 %vm1348_vm2, %v760_v61  ;;  %4404 = vmatprep.subr.bf16.mxu1 %v4268_v11 }
 0x11a   : > { %3938 = vmatmul.mubr.msk.f32.vlgmr.msra.gmra.mrb[14].mxu1 %vm1348_vm2, %v762_v62  ;;  %4263 = vmatpush3.bf16.msra.mxu0 %v4260_v57 }
 0x11b   : > { %4265 = vmatprep.subr.bf16.mxu0 %v4264_v63  ;;  %4016 = vmatprep.mubr.msk.f32.mxu1 %vm2005_vm3, %v5337_v16  ;;  %v2575_v16 = vld [vmem:[#allocation8] sm:$0xff] }
 0x11c   : > { %4406 = vmatpush3.bf16.msra.mxu1 %v4268_v11 }
 0x11d   : > { %4405 = vmatprep.subr.bf16.mxu1 %v4272_v15 }
 0x11e   : > { %4267 = vmatpush3.bf16.msra.mxu0 %v4264_v63 }
 0x11f   : > { %4269 = vmatprep.subr.bf16.mxu0 %v4268_v11 }
 0x120   : > { %4407 = vmatpush3.bf16.msra.mxu1 %v4272_v15 }
 0x123   : > { %4017 = vmatmul.mubr.msk.f32.vlgmr.msra.gmra.mrb[16].mxu1 %vm2005_vm3, %v5340_v17  ;;  %v2576_v17 = vld [vmem:[#allocation8 + $0x8] sm:$0xff] }
 0x124   : > { %4019 = vmatprep.mubr.msk.f32.mxu1 %vm2005_vm3, %v5344_v18  ;;  %v4276_v21 = vpack.c.bf16 %v2576_v17, %v2575_v16  ;;  %v2578_v18 = vld [vmem:[#allocation8 + $0x18] sm:$0xff] }
 0x125   : > { %v4280_v22 = vpack.c.bf16 %v2578_v18, %v2577_v20  ;;  %v2590_v16 = vld [vmem:[#allocation8 + $0x78] sm:$0xff] }
 0x126   : > { %4277 = vmatprep.subr.bf16.mxu1 %v4276_v21 }
 0x127   : > { %4020 = vmatmul.mubr.msk.f32.gmra.mrb[18].mxu1 %vm2005_vm3, %v5347_v19  ;;  %v2580_v19 = vld [vmem:[#allocation8 + $0x28] sm:$0xff] }
 0x128   : > { %4022 = vmatprep.mubr.msk.f32.mxu1 %vm2005_vm3, %v5360_v24  ;;  %4279 = vmatpush3.bf16.msra.mxu1 %v4276_v21  ;;  %v4284_v24 = vpack.c.bf16 %v2580_v19, %v2579_v23 }
 0x129   : > { %4281 = vmatprep.subr.bf16.mxu1 %v4280_v22 }
 0x12b   : > { %4023 = vmatmul.mubr.msk.f32.gmra.mrb[20].mxu1 %vm2005_vm3, %v5363_v25 }
 0x12c   : > { %4025 = vmatprep.mubr.msk.f32.mxu1 %vm2005_vm3, %v5370_v26  ;;  %4283 = vmatpush3.bf16.msra.mxu1 %v4280_v22 }
 0x12d   : > { %4285 = vmatprep.subr.bf16.mxu1 %v4284_v24 }
 0x12f   : > { %4026 = vmatmul.mubr.msk.f32.gmra.mrb[22].mxu1 %vm2005_vm3, %v5373_v27 }
 0x130   : > { %4287 = vmatpush3.bf16.msra.mxu1 %v4284_v24 }
 0x1d0   : > { %v833_v25 = vpop.f32.mrb[0].mxu0 }
 0x1d1   : > { %v3850_v26 = vpop.f32.mrb[1].mxu0  ;;  %v906_v28 = vpop.f32.mrb[0].mxu1  ;;  %3948 = vmatprep.mubr.msk.f32.mxu0 %vm2005_vm3, %v833_v25 }
 0x1d2   : > { %v3857_v27 = vpop.f32.mrb[1].mxu1  ;;  %3949 = vmatmul.mubr.msk.f32.vlgmr.msra.gmra.mrb[16].mxu0 %vm2005_vm3, %v906_v28 }
 0x1d3   : > { %4271 = vmatpush3.bf16.msra.mxu0 %v4268_v11  ;;  %v2588_v11 = vld [vmem:[#allocation8 + $0x68] sm:$0xff] }
 0x1d4   : > { %v979_v29 = vpop.f32.mrb[2].mxu0  ;;  %4273 = vmatprep.subr.bf16.mxu0 %v4272_v15  ;;  %v4300_v14 = vpack.c.bf16 %v2588_v11, %v2587_v8 }
 0x1d5   : > { %v3864_v30 = vpop.f32.mrb[3].mxu0  ;;  %v1052_v31 = vpop.f32.mrb[2].mxu1  ;;  %3951 = vmatprep.mubr.msk.f32.mxu0 %vm2005_vm3, %v979_v29 }
 0x1d6   : > { %v3871_v33 = vpop.f32.mrb[3].mxu1  ;;  %3952 = vmatmul.mubr.msk.f32.gmra.mrb[18].mxu0 %vm2005_vm3, %v1052_v31 }
 0x1d7   : > { %4275 = vmatpush3.bf16.msra.mxu0 %v4272_v15  ;;  %v2589_v15 = vld [vmem:[#allocation8 + $0x70] sm:$0xff] }
 0x1d8   : > { %v1125_v35 = vpop.f32.mrb[4].mxu0  ;;  %4332 = vmatprep.subr.bf16.mxu0 %v4878_v0  ;;  %v4304_v17 = vpack.c.bf16 %v2590_v16, %v2589_v15 }
 0x1d9   : > { %v3878_v36 = vpop.f32.mrb[5].mxu0  ;;  %v1198_v37 = vpop.f32.mrb[4].mxu1  ;;  %3954 = vmatprep.mubr.msk.f32.mxu0 %vm2005_vm3, %v1125_v35 }
 0x1da   : > { %v3885_v39 = vpop.f32.mrb[5].mxu1  ;;  %3955 = vmatmul.mubr.msk.f32.gmra.mrb[20].mxu0 %vm2005_vm3, %v1198_v37  ;;  %v5579_v36 = vld [vmem:[%s5802_s13] ss:$0 sm:$0xff]  ;;  %s3539_s13 = sshll.u32 %s5258_s26, 3 }
 0x1db   : > { %s693_s0 = scalar_lea.vmem [#allocation16], %s3539_s13 }
 0x1dc   : > { %v1271_v41 = vpop.f32.mrb[6].mxu0 }
 0x1dd   : > { %v3892_v42 = vpop.f32.mrb[7].mxu0  ;;  %v1344_v43 = vpop.f32.mrb[6].mxu1  ;;  %3957 = vmatprep.mubr.msk.f32.mxu0 %vm2005_vm3, %v1271_v41 }
 0x1de   : > { %v3899_v45 = vpop.f32.mrb[7].mxu1  ;;  %3958 = vmatmul.mubr.msk.f32.gmra.mrb[22].mxu0 %vm2005_vm3, %v1344_v43 }
 0x1e0   : > { %v3904_v47 = vpop.f32.mrb[8].mxu0 }
 0x1e1   : > { %v1421_v48 = vpop.f32.mrb[9].mxu0  ;;  %v3909_v49 = vpop.f32.mrb[8].mxu1 }
 0x1e2   : > { %3960 = vmatprep.mubr.msk.f32.mxu0 %vm2005_vm3, %v1421_v48  ;;  %v1502_v51 = vpop.f32.mrb[9].mxu1 }
 0x1e3   : > { %3961 = vmatmul.mubr.msk.f32.gmra.mrb[24].mxu0 %vm2005_vm3, %v3904_v47 }
 0x1e4   : > { %3963 = vmatprep.mubr.msk.f32.mxu0 %vm2005_vm3, %v1502_v51  ;;  %v3914_v52 = vpop.f32.mrb[10].mxu0 }
 0x1e5   : > { %v1583_v53 = vpop.f32.mrb[11].mxu0  ;;  %v3919_v55 = vpop.f32.mrb[10].mxu1 }
 0x1e6   : > { %v1664_v56 = vpop.f32.mrb[11].mxu1 }
 0x1e7   : > { %3964 = vmatmul.mubr.msk.f32.gmra.mrb[26].mxu0 %vm2005_vm3, %v3909_v49 }
 0x1e8   : > { %3966 = vmatprep.mubr.msk.f32.mxu0 %vm2005_vm3, %v1583_v53  ;;  %v3924_v57 = vpop.f32.mrb[12].mxu0 }
 0x1e9   : > { %v1745_v58 = vpop.f32.mrb[13].mxu0  ;;  %v3929_v59 = vpop.f32.mrb[12].mxu1 }
 0x1ea   : > { %v1826_v60 = vpop.f32.mrb[13].mxu1 }
 0x1eb   : > { %3967 = vmatmul.mubr.msk.f32.gmra.mrb[28].mxu0 %vm2005_vm3, %v3914_v52 }
 0x1ec   : > { %3969 = vmatprep.mubr.msk.f32.mxu0 %vm2005_vm3, %v1664_v56  ;;  %v3934_v61 = vpop.f32.mrb[14].mxu0 }
 0x1ed   : > { %v1907_v62 = vpop.f32.mrb[15].mxu0  ;;  %v3939_v63 = vpop.f32.mrb[14].mxu1 }
 0x1ee   : > { %v1988_v5 = vpop.f32.mrb[15].mxu1 }
 0x1ef   : > { %3970 = vmatmul.mubr.msk.f32.gmra.mrb[30].mxu0 %vm2005_vm3, %v3919_v55 }
 0x1f0   : > { %3972 = vmatprep.mubr.msk.f32.mxu0 %vm2005_vm3, %v1745_v58 }
 0x1f3   : > { %3973 = vmatmul.mubr.msk.f32.gmra.mrb[32].mxu0 %vm2005_vm3, %v3924_v57 }
 0x1f4   : > { %3975 = vmatprep.mubr.msk.f32.mxu0 %vm2005_vm3, %v1826_v60 }
 0x1f7   : > { %3976 = vmatmul.mubr.msk.f32.gmra.mrb[34].mxu0 %vm2005_vm3, %v3929_v59 }
 0x1f8   : > { %3978 = vmatprep.mubr.msk.f32.mxu0 %vm2005_vm3, %v1907_v62 }
 0x1fb   : > { %3979 = vmatmul.mubr.msk.f32.gmra.mrb[36].mxu0 %vm2005_vm3, %v3934_v61 }
 0x1fc   : > { %3981 = vmatprep.mubr.msk.f32.mxu0 %vm2005_vm3, %v1988_v5 }
 0x1ff   : > { %3982 = vmatmul.mubr.msk.f32.gmra.mrb[38].mxu0 %vm2005_vm3, %v3939_v63 }
 0x200   : > { %3992 = vmatprep.mubr.msk.f32.mxu0 %vm2005_vm3, %v5397_v32 }
 0x203   : > { %3993 = vmatmul.mubr.msk.f32.vlgmr.msra.gmra.mrb[16].mxu0 %vm2005_vm3, %v5409_v34 }
 0x204   : > { %3995 = vmatprep.mubr.msk.f32.mxu0 %vm2005_vm3, %v5422_v38  ;;  %v2584_v38 = vld [vmem:[#allocation8 + $0x48] sm:$0xff] }
 0x207   : > { %3996 = vmatmul.mubr.msk.f32.gmra.mrb[18].mxu0 %vm2005_vm3, %v5428_v40 }
 0x208   : > { %3998 = vmatprep.mubr.msk.f32.mxu0 %vm2005_vm3, %v5440_v44  ;;  %v2585_v44 = vld [vmem:[#allocation8 + $0x50] sm:$0xff] }
 0x20b   : > { %3999 = vmatmul.mubr.msk.f32.gmra.mrb[20].mxu0 %vm2005_vm3, %v5446_v46 }
 0x20c   : > { %4001 = vmatprep.mubr.msk.f32.mxu0 %vm2005_vm3, %v5458_v50 }
 0x20f   : > { %4002 = vmatmul.mubr.msk.f32.gmra.mrb[22].mxu0 %vm2005_vm3, %v5464_v54 }
 0x210   : > { %4004 = vmatprep.mubr.msk.f32.mxu0 %vm2005_vm3, %v5302_v2  ;;  %v4018_v2 = vpop.f32.mrb[16].mxu1 }
 0x211   : > { %v2481_v32 = vpop.f32.mrb[17].mxu1 }
 0x212   : > { %v4021_v34 = vpop.f32.mrb[18].mxu1 }
 0x213   : > { %4005 = vmatmul.mubr.msk.f32.gmra.mrb[24].mxu0 %vm2005_vm3, %v5305_v3  ;;  %v2581_v3 = vld [vmem:[#allocation8 + $0x30] sm:$0xff] }
 0x214   : > { %4007 = vmatprep.mubr.msk.f32.mxu0 %vm2005_vm3, %v5308_v4  ;;  %v2582_v4 = vld [vmem:[#allocation8 + $0x38] sm:$0xff] }
 0x217   : > { %4008 = vmatmul.mubr.msk.f32.gmra.mrb[26].mxu0 %vm2005_vm3, %v5313_v6  ;;  %v4288_v6 = vpack.c.bf16 %v2582_v4, %v2581_v3 }
 0x218   : > { %4010 = vmatprep.mubr.msk.f32.mxu0 %vm2005_vm3, %v5316_v7  ;;  %v2583_v7 = vld [vmem:[#allocation8 + $0x40] sm:$0xff] }
 0x219   : > { %4289 = vmatprep.subr.bf16.mxu1 %v4288_v6  ;;  %v4292_v40 = vpack.c.bf16 %v2584_v38, %v2583_v7 }
 0x21a   : > { %4291 = vmatpush3.bf16.msra.mxu1 %v4288_v6 }
 0x21b   : > { %4011 = vmatmul.mubr.msk.f32.gmra.mrb[28].mxu0 %vm2005_vm3, %v5321_v9  ;;  %v2491_v9 = vpop.f32.mrb[19].mxu1  ;;  %4293 = vmatprep.subr.bf16.mxu1 %v4292_v40 }
 0x21c   : > { %4013 = vmatprep.mubr.msk.f32.mxu0 %vm2005_vm3, %v5324_v10  ;;  %v4024_v10 = vpop.f32.mrb[20].mxu1 }
 0x21d   : > { %v2501_v46 = vpop.f32.mrb[21].mxu1 }
 0x21e   : > { %4295 = vmatpush3.bf16.msra.mxu1 %v4292_v40  ;;  %v4027_v54 = vpop.f32.mrb[22].mxu1 }
 0x21f   : > { %4014 = vmatmul.mubr.msk.f32.gmra.mrb[30].mxu0 %vm2005_vm3, %v5330_v13  ;;  %v2586_v13 = vld [vmem:[#allocation8 + $0x58] sm:$0xff]  ;;  %v2511_v12 = vpop.f32.mrb[23].mxu1 }
 0x220   : > { %4163 = vmatprep.mubr.msk.f32.mxu0 %vm4879_vm0, %v4880_v1  ;;  %v4296_v50 = vpack.c.bf16 %v2586_v13, %v2585_v44 }
 0x222   : > { %4297 = vmatprep.subr.bf16.mxu1 %v4296_v50 }
 0x223   : > { %4299 = vmatpush3.bf16.msra.mxu1 %v4296_v50 }
 0x224   : > { %4301 = vmatprep.subr.bf16.mxu1 %v4300_v14 }
 0x227   : > { %4303 = vmatpush3.bf16.msra.mxu1 %v4300_v14 }
 0x228   : > { %4305 = vmatprep.subr.bf16.mxu1 %v4304_v17 }
 0x22b   : > { %4307 = vmatpush3.bf16.msra.mxu1 %v4304_v17 }
 0x22c   : > { %4308 = vmatprep.subr.bf16.mxu1 %v4878_v0 }
 0x2c6   : > { %v3974_v20 = vpop.f32.mrb[32].mxu0 }
 0x2c7   : > { %v5560_v21 = vadd.f32 %v4018_v2, %v3974_v20  ;;  %v2224_v18 = vpop.f32.mrb[33].mxu0 }
 0x2c8   : > { %v5562_v22 = vadd.f32 %v2481_v32, %v2224_v18 }
 0x2ca   : > { %v3977_v23 = vpop.f32.mrb[34].mxu0  ;;  %v2543_v20 = vadd.f32 %v5579_v36, %v5562_v22 }
 0x2cb   : > { %v5564_v19 = vadd.f32 %v4021_v34, %v3977_v23  ;;  %v2234_v24 = vpop.f32.mrb[35].mxu0 }
 0x2cc   : > { %v5566_v25 = vadd.f32 %v2491_v9, %v2234_v24  ;;  %v2544_v24 = vadd.f32 %v5579_v36, %v5560_v21 }
 0x2cd   : > { %v2546_v22 = vadd.f32 %v5579_v36, %v5564_v19 }
 0x2ce   : > { %v3980_v26 = vpop.f32.mrb[36].mxu0 }
 0x2cf   : > { %v5568_v28 = vadd.f32 %v4024_v10, %v3980_v26  ;;  %v2244_v27 = vpop.f32.mrb[37].mxu0 }
 0x2d0   : > { %v5570_v29 = vadd.f32 %v2501_v46, %v2244_v27  ;;  %v2567_v27 = vmax.f32 %v2543_v20, 0.0  ;;  %v2940_v20 = vld [vmem:[#allocation11 + $0x68] sm:$0xff] }
 0x2d1   : > { %v2548_v21 = vadd.f32 %v5579_v36, %v5568_v28  ;;  %v2912_v28 = vld [vmem:[#allocation10 + $0x8] sm:$0xff] }
 0x2d2   : > { %v3983_v30 = vpop.f32.mrb[38].mxu0 }
 0x2d3   : > { %v5572_v31 = vadd.f32 %v4027_v54, %v3983_v30  ;;  %v2254_v33 = vpop.f32.mrb[39].mxu0  ;;  %v2545_v30 = vadd.f32 %v5579_v36, %v5566_v25 }
 0x2d4   : > { %v5574_v35 = vadd.f32 %v2511_v12, %v2254_v33  ;;  %v2568_v33 = vmax.f32 %v2544_v24, 0.0  ;;  %v2942_v24 = vld [vmem:[#allocation11 + $0x78] sm:$0xff] }
 0x2d5   : > { %v2550_v19 = vadd.f32 %v5579_v36, %v5572_v31  ;;  %v2915_v31 = vld [vmem:[#allocation10 + $0x20] sm:$0xff] }
 0x2d6   : > { %v3994_v37 = vpop.f32.mrb[16].mxu0  ;;  %v2549_v25 = vadd.f32 %v5579_v36, %v5574_v35  ;;  %v2913_v35 = vld [vmem:[#allocation10 + $0x10] sm:$0xff] }
 0x2d7   : > { %v2528_v39 = vadd.f32 %v3994_v37, %v5579_v36  ;;  %v2401_v41 = vpop.f32.mrb[17].mxu0  ;;  %v2569_v37 = vmax.f32 %v2545_v30, 0.0 }
 0x2d8   : > { %v2527_v42 = vadd.f32 %v5579_v36, %v2401_v41  ;;  %v2570_v41 = vmax.f32 %v2546_v22, 0.0 }
 0x2d9   : > { %v2552_v47 = vmax.f32 %v2528_v39, 0.0  ;;  %v2547_v39 = vadd.f32 %v5579_v36, %v5570_v29  ;;  %v2574_v29 = vmax.f32 %v2550_v19, 0.0 }
 0x2da   : > { %v2551_v43 = vmax.f32 %v2527_v42, 0.0  ;;  %v3997_v45 = vpop.f32.mrb[18].mxu0 }
 0x2db   : > { %v2530_v48 = vadd.f32 %v3997_v45, %v5579_v36  ;;  %v2411_v49 = vpop.f32.mrb[19].mxu0  ;;  %v2571_v42 = vmax.f32 %v2547_v39, 0.0  ;;  %v2573_v45 = vmax.f32 %v2549_v25, 0.0 }
 0x2dc   : > { %v2529_v51 = vadd.f32 %v5579_v36, %v2411_v49  ;;  %4060 = vmatprep.mubr.f32.mxu1 %v2551_v43  ;;  %v2572_v43 = vmax.f32 %v2548_v21, 0.0  ;;  %v2914_v49 = vld [vmem:[#allocation10 + $0x18] sm:$0xff] }
 0x2dd   : > { %4061 = vmatmul.mubr.f32.vlgmr.msra.gmra.mrb[24].mxu1 %v2552_v47  ;;  %v2554_v55 = vmax.f32 %v2530_v48, 0.0  ;;  %v2911_v47 = vld [vmem:[#allocation10] sm:$0xff] }
 0x2de   : > { %v2553_v52 = vmax.f32 %v2529_v51, 0.0  ;;  %v4000_v53 = vpop.f32.mrb[20].mxu0  ;;  %v4333_v48 = vpack.c.bf16 %v2912_v28, %v2911_v47  ;;  %v4336_v51 = vpack.c.bf16 %v2914_v49, %v2913_v35 }
 0x2df   : > { %v2532_v56 = vadd.f32 %v4000_v53, %v5579_v36  ;;  %v2421_v57 = vpop.f32.mrb[21].mxu0  ;;  %v2917_v53 = vld [vmem:[#allocation10 + $0x30] sm:$0xff] }
 0x2e0   : > { %v2531_v58 = vadd.f32 %v5579_v36, %v2421_v57  ;;  %4063 = vmatprep.mubr.f32.mxu1 %v2553_v52  ;;  %4334 = vmatpush3.bf16.msra.mxu0 %v4333_v48  ;;  %v2919_v57 = vld [vmem:[#allocation10 + $0x40] sm:$0xff] }
 0x2e1   : > { %4064 = vmatmul.mubr.f32.gmra.mrb[26].mxu1 %v2554_v55  ;;  %v2556_v61 = vmax.f32 %v2532_v56, 0.0  ;;  %4335 = vmatprep.subr.bf16.mxu0 %v4878_v0  ;;  %v2918_v55 = vld [vmem:[#allocation10 + $0x38] sm:$0xff] }
 0x2e2   : > { %v2555_v59 = vmax.f32 %v2531_v58, 0.0  ;;  %v4003_v60 = vpop.f32.mrb[22].mxu0  ;;  %v4342_v56 = vpack.c.bf16 %v2918_v55, %v2917_v53  ;;  %v2920_v58 = vld [vmem:[#allocation10 + $0x48] sm:$0xff] }
 0x2e3   : > { %v2534_v62 = vadd.f32 %v4003_v60, %v5579_v36  ;;  %v2431_v63 = vpop.f32.mrb[23].mxu0  ;;  %v2921_v60 = vld [vmem:[#allocation10 + $0x50] sm:$0xff] }
 0x2e4   : > { %v2533_v5 = vadd.f32 %v5579_v36, %v2431_v63  ;;  %4066 = vmatprep.mubr.f32.mxu1 %v2555_v59  ;;  %4337 = vmatpush3.bf16.msra.mxu0 %v4336_v51  ;;  %v4345_v59 = vpack.c.bf16 %v2920_v58, %v2919_v57  ;;  %v2923_v63 = vld [vmem:[#allocation10 + $0x60] sm:$0xff] }
 0x2e5   : > { %4067 = vmatmul.mubr.f32.gmra.mrb[28].mxu1 %v2556_v61  ;;  %v2558_v4 = vmax.f32 %v2534_v62, 0.0  ;;  %4338 = vmatprep.subr.bf16.mxu0 %v4878_v0  ;;  %v2922_v61 = vld [vmem:[#allocation10 + $0x58] sm:$0xff] }
 0x2e6   : > { %v2557_v2 = vmax.f32 %v2533_v5, 0.0  ;;  %v4006_v3 = vpop.f32.mrb[24].mxu0  ;;  %v4348_v62 = vpack.c.bf16 %v2922_v61, %v2921_v60  ;;  %v2924_v5 = vld [vmem:[#allocation10 + $0x68] sm:$0xff] }
 0x2e7   : > { %v2536_v32 = vadd.f32 %v4006_v3, %v5579_v36  ;;  %v2441_v6 = vpop.f32.mrb[25].mxu0  ;;  %v2925_v3 = vld [vmem:[#allocation10 + $0x70] sm:$0xff] }
 0x2e8   : > { %v2535_v34 = vadd.f32 %v5579_v36, %v2441_v6  ;;  %4069 = vmatprep.mubr.f32.mxu1 %v2557_v2  ;;  %v4351_v2 = vpack.c.bf16 %v2924_v5, %v2923_v63  ;;  %v2927_v6 = vld [vmem:[#allocation11] sm:$0xff] }
 0x2e9   : > { %4070 = vmatmul.mubr.f32.gmra.mrb[30].mxu1 %v2558_v4  ;;  %v2560_v9 = vmax.f32 %v2536_v32, 0.0  ;;  %v2926_v4 = vld [vmem:[#allocation10 + $0x78] sm:$0xff] }
 0x2ea   : > { %v2559_v7 = vmax.f32 %v2535_v34, 0.0  ;;  %v4009_v38 = vpop.f32.mrb[26].mxu0  ;;  %v4354_v32 = vpack.c.bf16 %v2926_v4, %v2925_v3  ;;  %v2928_v34 = vld [vmem:[#allocation11 + $0x8] sm:$0xff] }
 0x2eb   : > { %v2538_v40 = vadd.f32 %v4009_v38, %v5579_v36  ;;  %v2451_v10 = vpop.f32.mrb[27].mxu0  ;;  %v2929_v38 = vld [vmem:[#allocation11 + $0x10] sm:$0xff] }
 0x2ec   : > { %v2537_v44 = vadd.f32 %v5579_v36, %v2451_v10  ;;  %4072 = vmatprep.mubr.f32.mxu1 %v2559_v7  ;;  %v4309_v7 = vpack.c.bf16 %v2928_v34, %v2927_v6  ;;  %v2931_v10 = vld [vmem:[#allocation11 + $0x20] sm:$0xff] }
 0x2ed   : > { %4073 = vmatmul.mubr.f32.gmra.mrb[32].mxu1 %v2560_v9  ;;  %v2562_v50 = vmax.f32 %v2538_v40, 0.0  ;;  %v2930_v9 = vld [vmem:[#allocation11 + $0x18] sm:$0xff] }
 0x2ee   : > { %v2561_v13 = vmax.f32 %v2537_v44, 0.0  ;;  %v4012_v46 = vpop.f32.mrb[28].mxu0  ;;  %4310 = vmatpush3.bf16.msra.mxu1 %v4309_v7  ;;  %v4312_v40 = vpack.c.bf16 %v2930_v9, %v2929_v38  ;;  %v2932_v44 = vld [vmem:[#allocation11 + $0x28] sm:$0xff] }
 0x2ef   : > { %v2540_v54 = vadd.f32 %v4012_v46, %v5579_v36  ;;  %v2461_v8 = vpop.f32.mrb[29].mxu0  ;;  %4311 = vmatprep.subr.bf16.mxu1 %v4878_v0  ;;  %v2933_v46 = vld [vmem:[#allocation11 + $0x30] sm:$0xff] }
 0x2f0   : > { %v2539_v11 = vadd.f32 %v5579_v36, %v2461_v8  ;;  %4075 = vmatprep.mubr.f32.mxu1 %v2561_v13  ;;  %v4315_v13 = vpack.c.bf16 %v2932_v44, %v2931_v10  ;;  %v2935_v8 = vld [vmem:[#allocation11 + $0x40] sm:$0xff] }
 0x2f1   : > { %4076 = vmatmul.mubr.f32.gmra.mrb[34].mxu1 %v2562_v50  ;;  %v2564_v15 = vmax.f32 %v2540_v54, 0.0  ;;  %v2934_v50 = vld [vmem:[#allocation11 + $0x38] sm:$0xff] }
 0x2f2   : > { %v2563_v12 = vmax.f32 %v2539_v11, 0.0  ;;  %v4015_v14 = vpop.f32.mrb[30].mxu0  ;;  %4313 = vmatpush3.bf16.msra.mxu1 %v4312_v40  ;;  %v4318_v54 = vpack.c.bf16 %v2934_v50, %v2933_v46  ;;  %v2936_v11 = vld [vmem:[#allocation11 + $0x48] sm:$0xff] }
 0x2f3   : > { %v2542_v16 = vadd.f32 %v4015_v14, %v5579_v36  ;;  %v2471_v17 = vpop.f32.mrb[31].mxu0  ;;  %4314 = vmatprep.subr.bf16.mxu1 %v4878_v0  ;;  %v2937_v14 = vld [vmem:[#allocation11 + $0x50] sm:$0xff] }
 0x2f4   : > { %v2541_v18 = vadd.f32 %v5579_v36, %v2471_v17  ;;  %4078 = vmatprep.mubr.f32.mxu1 %v2563_v12  ;;  %v2916_v36 = vld [vmem:[#allocation10 + $0x28] sm:$0xff]  ;;  %v4321_v12 = vpack.c.bf16 %v2936_v11, %v2935_v8  ;;  %v2939_v17 = vld [vmem:[#allocation11 + $0x60] sm:$0xff] }
 0x2f5   : > { %4079 = vmatmul.mubr.f32.gmra.mrb[36].mxu1 %v2564_v15  ;;  %v2566_v26 = vmax.f32 %v2542_v16, 0.0  ;;  %v4339_v52 = vpack.c.bf16 %v2916_v36, %v2915_v31  ;;  %v2938_v15 = vld [vmem:[#allocation11 + $0x58] sm:$0xff] }
 0x2f6   : > { %v2565_v23 = vmax.f32 %v2541_v18, 0.0  ;;  %4316 = vmatpush3.bf16.msra.mxu1 %v4315_v13  ;;  %v4324_v16 = vpack.c.bf16 %v2938_v15, %v2937_v14  ;;  %v4327_v18 = vpack.c.bf16 %v2940_v20, %v2939_v17 }
 0x2f7   : > { %4340 = vmatpush3.bf16.msra.mxu0 %v4339_v52  ;;  %4317 = vmatprep.subr.bf16.mxu1 %v4878_v0 }
 0x2f8   : > { %4081 = vmatprep.mubr.f32.mxu1 %v2565_v23  ;;  %4341 = vmatprep.subr.bf16.mxu0 %v4878_v0  ;;  %v2941_v23 = vld [vmem:[#allocation11 + $0x70] sm:$0xff] }
 0x2f9   : > { %4082 = vmatmul.mubr.f32.gmra.mrb[38].mxu1 %v2566_v26  ;;  %v4330_v26 = vpack.c.bf16 %v2942_v24, %v2941_v23 }
 0x2fa   : > { %4084 = vmatprep.mubr.f32.mxu1 %v2567_v27  ;;  %4319 = vmatpush3.bf16.msra.mxu1 %v4318_v54  ;;  %v5634_v27 = vld [vmem:[%s5803_s4] ss:$0 sm:$0xff]  ;;  %s3344_s4 = sshll.u32 %s693_s0, 4  ;;  %s5708_s4 = int_to_ptr.vmem [resolvable:$true] %s3344_s4 }
 0x2fb   : > { %4343 = vmatpush3.bf16.msra.mxu0 %v4342_v56  ;;  %4320 = vmatprep.subr.bf16.mxu1 %v4878_v0  ;;  %p4791_p8 = scmp.lt.s32.totalorder %s5708_s4, %s4789_s3 }
 0x2fc   : > { %4344 = vmatprep.subr.bf16.mxu0 %v4878_v0 }
 0x2fd   : > { %4085 = vmatmul.mubr.f32.gmra.mrb[40].mxu1 %v2568_v33 }
 0x2fe   : > { %4087 = vmatprep.mubr.f32.mxu1 %v2569_v37  ;;  %4322 = vmatpush3.bf16.msra.mxu1 %v4321_v12 }
 0x2ff   : > { %4346 = vmatpush3.bf16.msra.mxu0 %v4345_v59  ;;  %4323 = vmatprep.subr.bf16.mxu1 %v4878_v0 }
 0x300   : > { %4347 = vmatprep.subr.bf16.mxu0 %v4878_v0 }
 0x301   : > { %4088 = vmatmul.mubr.f32.gmra.mrb[42].mxu1 %v2570_v41 }
 0x302   : > { %4090 = vmatprep.mubr.f32.mxu1 %v2571_v42  ;;  %4325 = vmatpush3.bf16.msra.mxu1 %v4324_v16 }
 0x303   : > { %4349 = vmatpush3.bf16.msra.mxu0 %v4348_v62  ;;  %4326 = vmatprep.subr.bf16.mxu1 %v4878_v0 }
 0x304   : > { %4350 = vmatprep.subr.bf16.mxu0 %v4878_v0 }
 0x305   : > { %4091 = vmatmul.mubr.f32.gmra.mrb[44].mxu1 %v2572_v43 }
 0x306   : > { %4093 = vmatprep.mubr.f32.mxu1 %v2573_v45  ;;  %4328 = vmatpush3.bf16.msra.mxu1 %v4327_v18 }
 0x307   : > { %4352 = vmatpush3.bf16.msra.mxu0 %v4351_v2  ;;  %4329 = vmatprep.subr.bf16.mxu1 %v4878_v0 }
 0x308   : > { %4353 = vmatprep.subr.bf16.mxu0 %v4878_v0 }
 0x309   : > { %4094 = vmatmul.mubr.f32.gmra.mrb[46].mxu1 %v2574_v29 }
 0x30a   : > { %4128 = vmatprep.mubr.msk.f32.mxu1 %vm4879_vm0, %v4880_v1  ;;  %4331 = vmatpush3.bf16.msra.mxu1 %v4330_v26 }
 0x30b   : > { %4355 = vmatpush3.bf16.msra.mxu0 %v4354_v32  ;;  %4356 = vmatprep.subr.bf16.mxu1 %v4878_v0 }
 0x30c   : > { %4380 = vmatprep.subr.bf16.mxu0 %v4878_v0 }
 0x3b0   : > { %v4062_v30 = vpop.f32.mrb[24].mxu1 }
 0x3b1   : > { %v2670_v33 = vadd.f32 %v4062_v30, %v5634_v27  ;;  %v2664_v22 = vpop.f32.mrb[25].mxu1 }
 0x3b2   : > { %v2665_v37 = vadd.f32 %v5634_v27, %v2664_v22 }
 0x3b3   : > { %v2784_v39 = vmax.f32 %v2670_v33, 0.0 }
 0x3b4   : > { %v2783_v41 = vmax.f32 %v2665_v37, 0.0  ;;  %v4065_v21 = vpop.f32.mrb[26].mxu1 }
 0x3b5   : > { %v2813_v42 = vrot.slane %v2784_v39, 4  ;;  %v2680_v25 = vadd.f32 %v4065_v21, %v5634_v27  ;;  %v2674_v43 = vpop.f32.mrb[27].mxu1 }
 0x3b6   : > { %v2807_v19 = vrot.slane %v2783_v41, 4  ;;  %v2675_v45 = vadd.f32 %v5634_v27, %v2674_v43 }
 0x3b7   : > { %v2814_v29 = vadd.f32 %v2813_v42, %v2784_v39  ;;  %v2786_v47 = vmax.f32 %v2680_v25, 0.0 }
 0x3b8   : > { %v2808_v28 = vadd.f32 %v2807_v19, %v2783_v41  ;;  %v2785_v48 = vmax.f32 %v2675_v45, 0.0  ;;  %v4068_v35 = vpop.f32.mrb[28].mxu1 }
 0x3b9   : > { %v2815_v49 = vrot.slane %v2814_v29, 2  ;;  %v2825_v51 = vrot.slane %v2786_v47, 4  ;;  %v2690_v31 = vadd.f32 %v4068_v35, %v5634_v27  ;;  %v2684_v36 = vpop.f32.mrb[29].mxu1 }
 0x3ba   : > { %v2809_v52 = vrot.slane %v2808_v28, 2  ;;  %v2819_v53 = vrot.slane %v2785_v48, 4  ;;  %v2685_v55 = vadd.f32 %v5634_v27, %v2684_v36 }
 0x3bb   : > { %v2816_v56 = vadd.f32 %v2815_v49, %v2814_v29  ;;  %v2826_v57 = vadd.f32 %v2825_v51, %v2786_v47  ;;  %v2788_v58 = vmax.f32 %v2690_v31, 0.0 }
 0x3bc   : > { %v2810_v59 = vadd.f32 %v2809_v52, %v2808_v28  ;;  %v2820_v60 = vadd.f32 %v2819_v53, %v2785_v48  ;;  %v2787_v61 = vmax.f32 %v2685_v55, 0.0  ;;  %v4071_v62 = vpop.f32.mrb[30].mxu1 }
 0x3bd   : > { %v2817_v63 = vrot.slane %v2816_v56, 1  ;;  %v2827_v5 = vrot.slane %v2826_v57, 2  ;;  %v2837_v2 = vrot.slane %v2788_v58, 4  ;;  %v2700_v3 = vadd.f32 %v4071_v62, %v5634_v27  ;;  %v2694_v4 = vpop.f32.mrb[31].mxu1 }
 0x3be   : > { %v2811_v32 = vrot.slane %v2810_v59, 1  ;;  %v2821_v6 = vrot.slane %v2820_v60, 2  ;;  %v2831_v34 = vrot.slane %v2787_v61, 4  ;;  %v2695_v7 = vadd.f32 %v5634_v27, %v2694_v4 }
 0x3bf   : > { %v2818_v38 = vadd.f32 %v2817_v63, %v2816_v56  ;;  %v2828_v9 = vadd.f32 %v2827_v5, %v2826_v57  ;;  %v2838_v40 = vadd.f32 %v2837_v2, %v2788_v58  ;;  %v2790_v10 = vmax.f32 %v2700_v3, 0.0 }
 0x3c0   : > { %v2812_v44 = vadd.f32 %v2811_v32, %v2810_v59  ;;  %v2822_v13 = vadd.f32 %v2821_v6, %v2820_v60  ;;  %v2832_v46 = vadd.f32 %v2831_v34, %v2787_v61  ;;  %v2789_v50 = vmax.f32 %v2695_v7, 0.0  ;;  %v4074_v54 = vpop.f32.mrb[32].mxu1 }
 0x3c1   : > { %v2829_v8 = vrot.slane %v2828_v9, 1  ;;  %v2839_v11 = vrot.slane %v2838_v40, 2  ;;  %v2849_v12 = vrot.slane %v2790_v10, 4  ;;  %v2710_v14 = vadd.f32 %v4074_v54, %v5634_v27  ;;  %v2704_v15 = vpop.f32.mrb[33].mxu1 }
 0x3c2   : > { %v3044_v16 = vsel %vm2951_vm4, %v2818_v38, %v2812_v44  ;;  %v2823_v17 = vrot.slane %v2822_v13, 1  ;;  %v2833_v20 = vrot.slane %v2832_v46, 2  ;;  %v2843_v18 = vrot.slane %v2789_v50, 4 }
 0x3c3   : > { %v2840_v23 = vadd.f32 %v2839_v11, %v2838_v40  ;;  %v2850_v24 = vadd.f32 %v2849_v12, %v2790_v10  ;;  %v2792_v26 = vmax.f32 %v2710_v14, 0.0  ;;  %v2705_v37 = vadd.f32 %v5634_v27, %v2704_v15 }
 0x3c4   : > { %v2824_v30 = vadd.f32 %v2823_v17, %v2822_v13  ;;  %v2834_v33 = vadd.f32 %v2833_v20, %v2832_v46  ;;  %v2844_v22 = vadd.f32 %v2843_v18, %v2789_v50  ;;  %v4077_v39 = vpop.f32.mrb[34].mxu1  ;;  %v2830_v41 = vadd.f32 %v2829_v8, %v2828_v9 }
 0x3c5   : > { %v2841_v21 = vrot.slane %v2840_v23, 1  ;;  %v2851_v42 = vrot.slane %v2850_v24, 2  ;;  %v2720_v25 = vadd.f32 %v4077_v39, %v5634_v27  ;;  %v2714_v43 = vpop.f32.mrb[35].mxu1  ;;  %v2791_v47 = vmax.f32 %v2705_v37, 0.0 }
 0x3c6   : > { %v3045_v19 = vsel %vm2953_vm5, %v2824_v30, %v3044_v16  ;;  %v2835_v45 = vrot.slane %v2834_v33, 1  ;;  %v2845_v29 = vrot.slane %v2844_v22, 2  ;;  %v2715_v36 = vadd.f32 %v5634_v27, %v2714_v43 }
 0x3c7   : > { %v3046_v28 = vsel %vm2955_vm6, %v2830_v41, %v3045_v19  ;;  %v2852_v48 = vadd.f32 %v2851_v42, %v2850_v24  ;;  %v2794_v35 = vmax.f32 %v2720_v25, 0.0  ;;  %v2855_v31 = vadd.f32 %v2792_v26, %v2791_v47 }
 0x3c8   : > { %v2836_v49 = vadd.f32 %v2835_v45, %v2834_v33  ;;  %v2846_v51 = vadd.f32 %v2845_v29, %v2844_v22  ;;  %v4080_v52 = vpop.f32.mrb[36].mxu1  ;;  %v2842_v53 = vadd.f32 %v2841_v21, %v2840_v23  ;;  %v2793_v61 = vmax.f32 %v2715_v36, 0.0 }
 0x3c9   : > { %v2853_v55 = vrot.slane %v2852_v48, 1  ;;  %v2730_v56 = vadd.f32 %v4080_v52, %v5634_v27  ;;  %v2724_v57 = vpop.f32.mrb[37].mxu1  ;;  %v2856_v60 = vrot.slane %v2855_v31, 4 }
 0x3ca   : > { %v3047_v58 = vsel %vm2957_vm7, %v2836_v49, %v3046_v28  ;;  %v2847_v59 = vrot.slane %v2846_v51, 1  ;;  %v2725_v63 = vadd.f32 %v5634_v27, %v2724_v57  ;;  %v2862_v4 = vadd.f32 %v2794_v35, %v2793_v61 }
 0x3cb   : > { %v2796_v62 = vmax.f32 %v2730_v56, 0.0  ;;  %v3048_v5 = vsel %vm2959_vm8, %v2842_v53, %v3047_v58  ;;  %v2857_v3 = vadd.f32 %v2856_v60, %v2855_v31  ;;  %v2854_v6 = vadd.f32 %v2853_v55, %v2852_v48 }
 0x3cc   : > { %v2848_v2 = vadd.f32 %v2847_v59, %v2846_v51  ;;  %v4083_v32 = vpop.f32.mrb[38].mxu1  ;;  %v2795_v34 = vmax.f32 %v2725_v63, 0.0  ;;  %v2863_v40 = vrot.slane %v2862_v4, 4 }
 0x3cd   : > { %v2740_v7 = vadd.f32 %v4083_v32, %v5634_v27  ;;  %v2734_v38 = vpop.f32.mrb[39].mxu1  ;;  %v2858_v9 = vrot.slane %v2857_v3, 2 }
 0x3ce   : > { %v2735_v10 = vadd.f32 %v5634_v27, %v2734_v38  ;;  %v3049_v44 = vsel %vm2961_vm9, %v2848_v2, %v3048_v5  ;;  %v2869_v13 = vadd.f32 %v2796_v62, %v2795_v34  ;;  %v2864_v8 = vadd.f32 %v2863_v40, %v2862_v4 }
 0x3cf   : > { %v2798_v46 = vmax.f32 %v2740_v7, 0.0  ;;  %v3050_v50 = vsel %vm2963_vm10, %v2854_v6, %v3049_v44  ;;  %v2859_v54 = vadd.f32 %v2858_v9, %v2857_v3 }
 0x3d0   : > { %v2797_v11 = vmax.f32 %v2735_v10, 0.0  ;;  %v4086_v12 = vpop.f32.mrb[40].mxu1  ;;  %4164 = vmatmul.mubr.f32.vlgmr.msra.gmra.mrb[40].mxu0 %v3050_v50  ;;  %v2870_v14 = vrot.slane %v2869_v13, 4  ;;  %v2865_v17 = vrot.slane %v2864_v8, 2 }
 0x3d1   : > { %v2750_v15 = vadd.f32 %v4086_v12, %v5634_v27  ;;  %v2744_v16 = vpop.f32.mrb[41].mxu1  ;;  %4233 = vmatprep.mubr.msk.f32.mxu0 %vm4879_vm0, %v4880_v1  ;;  %v2860_v23 = vrot.slane %v2859_v54, 1 }
 0x3d2   : > { %v2876_v20 = vadd.f32 %v2798_v46, %v2797_v11  ;;  %v2745_v18 = vadd.f32 %v5634_v27, %v2744_v16  ;;  %v2871_v24 = vadd.f32 %v2870_v14, %v2869_v13  ;;  %v2866_v30 = vadd.f32 %v2865_v17, %v2864_v8 }
 0x3d3   : > { %v2800_v26 = vmax.f32 %v2750_v15, 0.0  ;;  %v2861_v45 = vadd.f32 %v2860_v23, %v2859_v54 }
 0x3d4   : > { %v2877_v33 = vrot.slane %v2876_v20, 4  ;;  %v2799_v22 = vmax.f32 %v2745_v18, 0.0  ;;  %v4089_v37 = vpop.f32.mrb[42].mxu1  ;;  %v2872_v39 = vrot.slane %v2871_v24, 2  ;;  %v2867_v42 = vrot.slane %v2866_v30, 1 }
 0x3d5   : > { %v2760_v41 = vadd.f32 %v4089_v37, %v5634_v27  ;;  %v2754_v21 = vpop.f32.mrb[43].mxu1 }
 0x3d6   : > { %v2878_v25 = vadd.f32 %v2877_v33, %v2876_v20  ;;  %v2883_v43 = vadd.f32 %v2800_v26, %v2799_v22  ;;  %v2755_v19 = vadd.f32 %v5634_v27, %v2754_v21  ;;  %v2873_v29 = vadd.f32 %v2872_v39, %v2871_v24  ;;  %v3131_v21 = vld [vmem:[#allocation13] sm:$0xff] }
 0x3d7   : > { %v2802_v47 = vmax.f32 %v2760_v41, 0.0  ;;  %v2868_v28 = vadd.f32 %v2867_v42, %v2866_v30  ;;  %v3132_v42 = vld [vmem:[#allocation13 + $0x8] sm:$0xff] }
 0x3d8   : > { %v2879_v48 = vrot.slane %v2878_v25, 2  ;;  %v2884_v35 = vrot.slane %v2883_v43, 4  ;;  %v2801_v49 = vmax.f32 %v2755_v19, 0.0  ;;  %v4092_v51 = vpop.f32.mrb[44].mxu1  ;;  %v2874_v31 = vrot.slane %v2873_v29, 1  ;;  %v3134_v19 = vld [vmem:[#allocation13 + $0x18] sm:$0xff] }
 0x3d9   : > { %v2770_v36 = vadd.f32 %v4092_v51, %v5634_v27  ;;  %v2764_v52 = vpop.f32.mrb[45].mxu1  ;;  %v2952_v53 = vsel %vm2951_vm4, %v2868_v28, %v2861_v45  ;;  %v3140_v51 = vld [vmem:[#allocation13 + $0x48] sm:$0xff] }
 0x3da   : > { %v2880_v55 = vadd.f32 %v2879_v48, %v2878_v25  ;;  %v2885_v56 = vadd.f32 %v2884_v35, %v2883_v43  ;;  %v2890_v57 = vadd.f32 %v2802_v47, %v2801_v49  ;;  %v2875_v58 = vadd.f32 %v2874_v31, %v2873_v29  ;;  %v3133_v25 = vld [vmem:[#allocation13 + $0x10] sm:$0xff]  ;;  %v3135_v29 = vld [vmem:[#allocation13 + $0x20] sm:$0xff]  ;;  %v3136_v47 = vld [vmem:[#allocation13 + $0x28] sm:$0xff] }
 0x3db   : > { %v2804_v59 = vmax.f32 %v2770_v36, 0.0  ;;  %v2765_v60 = vadd.f32 %v5634_v27, %v2764_v52  ;;  %v4357_v43 = vpack.c.bf16 %v3132_v42, %v3131_v21  ;;  %v4360_v45 = vpack.c.bf16 %v3134_v19, %v3133_v25  ;;  %v3137_v48 = vld [vmem:[#allocation13 + $0x30] sm:$0xff]  ;;  %v3138_v35 = vld [vmem:[#allocation13 + $0x38] sm:$0xff] }
 0x3dc   : > { %v2881_v61 = vrot.slane %v2880_v55, 1  ;;  %v2886_v62 = vrot.slane %v2885_v56, 2  ;;  %v2891_v63 = vrot.slane %v2890_v57, 4  ;;  %v4095_v5 = vpop.f32.mrb[46].mxu1  ;;  %v2954_v2 = vsel %vm2953_vm5, %v2875_v58, %v2952_v53  ;;  %v3141_v36 = vld [vmem:[#allocation13 + $0x50] sm:$0xff]  ;;  %v3142_v52 = vld [vmem:[#allocation13 + $0x58] sm:$0xff] }
 0x3dd   : > { %v2803_v3 = vmax.f32 %v2765_v60, 0.0  ;;  %v2780_v4 = vadd.f32 %v4095_v5, %v5634_v27  ;;  %v2774_v32 = vpop.f32.mrb[47].mxu1  ;;  %v4363_v28 = vpack.c.bf16 %v3136_v47, %v3135_v29  ;;  %v4366_v49 = vpack.c.bf16 %v3138_v35, %v3137_v48  ;;  %v3145_v58 = vld [vmem:[#allocation13 + $0x70] sm:$0xff] }
 0x3de   : > { %v2882_v6 = vadd.f32 %v2881_v61, %v2880_v55  ;;  %v2887_v34 = vadd.f32 %v2886_v62, %v2885_v56  ;;  %v2892_v7 = vadd.f32 %v2891_v63, %v2890_v57  ;;  %v2775_v38 = vadd.f32 %v5634_v27, %v2774_v32  ;;  %v3143_v55 = vld [vmem:[#allocation13 + $0x60] sm:$0xff]  ;;  %v3144_v56 = vld [vmem:[#allocation13 + $0x68] sm:$0xff]  ;;  %v3227_v63 = vld [vmem:[#allocation14 + $0x10] sm:$0xff] }
 0x3df   : > { %v2897_v9 = vadd.f32 %v2804_v59, %v2803_v3  ;;  %v2806_v40 = vmax.f32 %v2780_v4, 0.0  ;;  %v4372_v53 = vpack.c.bf16 %v3142_v52, %v3141_v36  ;;  %v4375_v57 = vpack.c.bf16 %v3144_v56, %v3143_v55  ;;  %v3146_v59 = vld [vmem:[#allocation13 + $0x78] sm:$0xff]  ;;  %v3225_v61 = vld [vmem:[#allocation14] sm:$0xff]  ;;  %v3226_v62 = vld [vmem:[#allocation14 + $0x8] sm:$0xff] }
 0x3e0   : > { %v2956_v10 = vsel %vm2955_vm6, %v2882_v6, %v2954_v2  ;;  %v2888_v44 = vrot.slane %v2887_v34, 1  ;;  %v2893_v13 = vrot.slane %v2892_v7, 2  ;;  %v2805_v46 = vmax.f32 %v2775_v38, 0.0  ;;  %v3228_v2 = vld [vmem:[#allocation14 + $0x18] sm:$0xff]  ;;  %v3229_v4 = vld [vmem:[#allocation14 + $0x20] sm:$0xff]  ;;  %v3230_v32 = vld [vmem:[#allocation14 + $0x28] sm:$0xff] }
 0x3e1   : > { %v2898_v50 = vrot.slane %v2897_v9, 4  ;;  %v4378_v60 = vpack.c.bf16 %v3146_v59, %v3145_v58  ;;  %v4381_v5 = vpack.c.bf16 %v3226_v62, %v3225_v61  ;;  %v4384_v3 = vpack.c.bf16 %v3228_v2, %v3227_v63 }
 0x3e2   : > { %v2889_v54 = vadd.f32 %v2888_v44, %v2887_v34  ;;  %v2894_v8 = vadd.f32 %v2893_v13, %v2892_v7  ;;  %v2904_v11 = vadd.f32 %v2806_v40, %v2805_v46  ;;  %v4387_v6 = vpack.c.bf16 %v3230_v32, %v3229_v4  ;;  %v3231_v34 = vld [vmem:[#allocation14 + $0x30] sm:$0xff]  ;;  %v3232_v7 = vld [vmem:[#allocation14 + $0x38] sm:$0xff]  ;;  %v3234_v40 = vld [vmem:[#allocation14 + $0x48] sm:$0xff] }
 0x3e3   : > { %v2899_v12 = vadd.f32 %v2898_v50, %v2897_v9  ;;  %4382 = vmatpush3.bf16.msra.mxu0 %v4381_v5  ;;  %v4390_v38 = vpack.c.bf16 %v3232_v7, %v3231_v34  ;;  %v3233_v9 = vld [vmem:[#allocation14 + $0x40] sm:$0xff]  ;;  %v3235_v44 = vld [vmem:[#allocation14 + $0x50] sm:$0xff]  ;;  %v3236_v13 = vld [vmem:[#allocation14 + $0x58] sm:$0xff] }
 0x3e4   : > { %v2895_v14 = vrot.slane %v2894_v8, 1  ;;  %v2905_v15 = vrot.slane %v2904_v11, 4  ;;  %v2958_v16 = vsel %vm2957_vm7, %v2889_v54, %v2956_v10  ;;  %4383 = vmatprep.subr.bf16.mxu0 %v4878_v0  ;;  %v4393_v10 = vpack.c.bf16 %v3234_v40, %v3233_v9  ;;  %v3237_v50 = vld [vmem:[#allocation14 + $0x60] sm:$0xff]  ;;  %v3238_v54 = vld [vmem:[#allocation14 + $0x68] sm:$0xff] }
 0x3e5   : > { %v2900_v17 = vrot.slane %v2899_v12, 2  ;;  %v4396_v46 = vpack.c.bf16 %v3236_v13, %v3235_v44 }
 0x3e6   : > { %v2896_v20 = vadd.f32 %v2895_v14, %v2894_v8  ;;  %v2906_v18 = vadd.f32 %v2905_v15, %v2904_v11  ;;  %v4399_v8 = vpack.c.bf16 %v3238_v54, %v3237_v50  ;;  %v3622_v15 = vld [vmem:[%s5804_s16] ss:$0 sm:$0xff]  ;;  %s5807_s16 = sld [smem:[#allocation31_spill]] }
 0x3e7   : > { %v2901_v27 = vadd.f32 %v2900_v17, %v2899_v12  ;;  %4385 = vmatpush3.bf16.msra.mxu0 %v4384_v3 }
 0x3e8   : > { %v2907_v23 = vrot.slane %v2906_v18, 2  ;;  %v2960_v24 = vsel %vm2959_vm8, %v2896_v20, %v2958_v16  ;;  %4386 = vmatprep.subr.bf16.mxu0 %v4878_v0 }
 0x3e9   : > { %v2902_v26 = vrot.slane %v2901_v27, 1 }
 0x3ea   : > { %v2908_v30 = vadd.f32 %v2907_v23, %v2906_v18  ;;  %v3240_v23 = vld [vmem:[#allocation14 + $0x78] sm:$0xff] }
 0x3eb   : > { %v2903_v33 = vadd.f32 %v2902_v26, %v2901_v27  ;;  %4388 = vmatpush3.bf16.msra.mxu0 %v4387_v6  ;;  %v3239_v27 = vld [vmem:[#allocation14 + $0x70] sm:$0xff] }
 0x3ec   : > { %v2909_v22 = vrot.slane %v2908_v30, 1  ;;  %4389 = vmatprep.subr.bf16.mxu0 %v4878_v0  ;;  %s5706_s19 = scalar_lea.hbm %s5807_s16, %s3626_s18 }
 0x3ed   : > { %v2962_v37 = vsel %vm2961_vm9, %v2903_v33, %v2960_v24  ;;  %v4402_v24 = vpack.c.bf16 %v3240_v23, %v3239_v27 }
 0x3ee   : > { %v2910_v39 = vadd.f32 %v2909_v22, %v2908_v30 }
 0x3ef   : > { %4391 = vmatpush3.bf16.msra.mxu0 %v4390_v38 }
 0x3f0   : > { %v2964_v41 = vsel %vm2963_vm10, %v2910_v39, %v2962_v37  ;;  %4392 = vmatprep.subr.bf16.mxu0 %v4878_v0  ;;  %v3624_v37 = vld [vmem:[%s5806_s28] ss:$0 sm:$0xff] }
 0x3f1   : > { %4129 = vmatmul.mubr.f32.vlgmr.msra.gmra.mrb[48].mxu1 %v2964_v41 }
 0x3f2   : > { %4198 = vmatprep.mubr.msk.f32.mxu1 %vm4879_vm0, %v4880_v1  ;;  %4358 = vmatpush3.bf16.msra.mxu1 %v4357_v43  ;;  %v3139_v1 = vld [vmem:[#allocation13 + $0x40] sm:$0xff] }
 0x3f3   : > { %4359 = vmatprep.subr.bf16.mxu1 %v4878_v0  ;;  %v4369_v31 = vpack.c.bf16 %v3140_v51, %v3139_v1  ;;  %4394 = vmatpush3.bf16.msra.mxu0 %v4393_v10 }
 0x3f4   : > { %4395 = vmatprep.subr.bf16.mxu0 %v4878_v0 }
 0x3f6   : > { %4361 = vmatpush3.bf16.msra.mxu1 %v4360_v45 }
 0x3f7   : > { %4362 = vmatprep.subr.bf16.mxu1 %v4878_v0  ;;  %4397 = vmatpush3.bf16.msra.mxu0 %v4396_v46 }
 0x3f8   : > { %4398 = vmatprep.subr.bf16.mxu0 %v4878_v0 }
 0x3fa   : > { %4364 = vmatpush3.bf16.msra.mxu1 %v4363_v28 }
 0x3fb   : > { %4365 = vmatprep.subr.bf16.mxu1 %v4878_v0  ;;  %4400 = vmatpush3.bf16.msra.mxu0 %v4399_v8 }
 0x3fc   : > { %4401 = vmatprep.subr.bf16.mxu0 %v4878_v0 }
 0x3fe   : > { %4367 = vmatpush3.bf16.msra.mxu1 %v4366_v49 }
 0x3ff   : > { %4368 = vmatprep.subr.bf16.mxu1 %v4878_v0  ;;  %4403 = vmatpush3.bf16.msra.mxu0 %v4402_v24 }
 0x402   : > { %4370 = vmatpush3.bf16.msra.mxu1 %v4369_v31 }
 0x403   : > { %4371 = vmatprep.subr.bf16.mxu1 %v4878_v0 }
 0x406   : > { %4373 = vmatpush3.bf16.msra.mxu1 %v4372_v53 }
 0x407   : > { %4374 = vmatprep.subr.bf16.mxu1 %v4878_v0 }
 0x40a   : > { %4376 = vmatpush3.bf16.msra.mxu1 %v4375_v57 }
 0x40b   : > { %4377 = vmatprep.subr.bf16.mxu1 %v4878_v0  ;;  %v3623_v0 = vld [vmem:[%s5805_s20] ss:$0 sm:$0xff]  ;;  %s4784_s20 = scalar_lea.vmem %s5708_s4, 128 }
 0x40c   : > { %p4785_p1 = scmp.ne.s32.totalorder %s5708_s4, %s4784_s20  ;;  %p4792_p6 = scmp.lt.s32.totalorder %s4790_s15, %s4784_s20 }
 0x40e   : > { %4379 = vmatpush3.bf16.msra.mxu1 %v4378_v60  ;;  %p4786_p0 = pnand %p4785_p1, %p5808_p13  ;;  %p4793_p10 = por %p4792_p6, %p4791_p8 }
 0x410   : > { %p4787_p2 = pneg %p4786_p0 }
 0x412   : > { %p4794_p11 = pnand %p4793_p10, %p4787_p2 }
 0x4a3   : > { %v3118_v11 = vpop.f32.mrb[40].mxu0 }
 0x4a4   : > { %v4165_v12 = vpop.f32.mrb[41].mxu0 }
 0x4c4   : > { %v3032_v14 = vpop.f32.mrb[48].mxu1 }
 0x4c5   : > { %v3119_v16 = vadd.f32 %v3118_v11, %v3032_v14  ;;  %v4130_v17 = vpop.f32.mrb[49].mxu1 }
 0x4c7   : > { %v3129_v20 = vadd.f32 %v3622_v15, %v3119_v16 }
 0x4c9   : > { %v3130_v18 = vmax.f32 %v3129_v20, 0.0 }
 0x4cb   : > { %4199 = vmatmul.mubr.f32.vlgmr.msra.gmra.mrb[50].mxu1 %v3130_v18 }
 0x59e   : > { %v3220_v26 = vpop.f32.mrb[50].mxu1 }
 0x59f   : > { %v3221_v30 = vadd.f32 %v3623_v0, %v3220_v26  ;;  %v4200_v33 = vpop.f32.mrb[51].mxu1 }
 0x5a1   : > { %v3224_v22 = vmax.f32 %v3221_v30, 0.0 }
 0x5a3   : > { %4234 = vmatmul.mubr.f32.vlgmr.msra.gmra.mrb[42].mxu0 %v3224_v22 }
 0x676   : > { %v3314_v39 = vpop.f32.mrb[42].mxu0 }
 0x677   : > { %v3315_v41 = vadd.f32 %v3624_v37, %v3314_v39  ;;  %v4235_v21 = vpop.f32.mrb[43].mxu0 }
 0x679   : > { %3318 = vmax.xlane.f32.xlu0 %v3315_v41 }
 0x706   : > { %v3319_v42 = vpop.xlane.xlu0 %3318 }
 0x707   : > { %v3320_v25 = vsub.f32 %v3315_v41, %v3319_v42 }
 0x709   : > { %v3321_v43 = vmul.f32 1.442695, %v3320_v25 }
 0x70b   : > { %4554 = vpow2.f32 %v3321_v43 }
 0x715   : > { %v4555_v19 = vpop.eup %4554 }
 0x716   : > { %3323 = vadd.xlane.f32.xlu0 %v4555_v19 }
 0x7a3   : > { %v3324_v45 = vpop.xlane.xlu0 %3323 }
 0x7a4   : > { %4556 = vlog2.f32 %v3324_v45 }
 0x7ae   : > { %v4557_v29 = vpop.eup %4556 }
 0x7af   : > { %v3326_v47 = vmul.f32 0.6931472, %v4557_v29 }
 0x7b1   : > { %v3327_v28 = vadd.f32 %v3326_v47, %v3319_v42 }
 0x7b3   : > { %v3328_v48 = vsub.f32 %v3315_v41, %v3327_v28 }
 0x7b5   : > { %3329 = vst [vmem:[%s693_s0] sm:$0xff] %v3328_v48 }
 0x7b6   : > { %4797 = shalt.err (!%p4794_p11)
}
 0x7b7   : > { %s4798_s26 = scalar_lea.hbm %s5706_s19, 128  ;;  %s4802_s18 = scalar_lea.hbm %s5807_s16, 256 }
 0x7b8   : > { %p4799_p3 = scmp.ne.s32.totalorder %s5706_s19, %s4798_s26  ;;  %p4803_p7 = scmp.lt.u32.totalorder %s5706_s19, %s5807_s16 }
 0x7b9   : > { %p4804_p4 = scmp.lt.u32.totalorder %s4802_s18, %s4798_s26  ;;  %p4806_p1 = scmp.lt.u32.totalorder %s4798_s26, %s5706_s19 }
 0x7ba   : > { %p4800_p5 = pnand %p4799_p3, %p5808_p13 }
 0x7bb   : > { %p4805_p12 = por %p4804_p4, %p4803_p7 }
 0x7bc   : > { %p4801_p9 = pneg %p4800_p5 }
 0x7bd   : > { %p4807_p0 = por %p4806_p1, %p4805_p12 }
 0x7bf   : > { %p4808_p2 = pnand %p4807_p0, %p4801_p9 }
 0x7c1   : > { %4811 = shalt.err (!%p4808_p2)
}
 0x7c2   : > { %4462 = dma.vmem_to_hbm [thread:$0]  (%p5808_p13), %s5708_s4, 128, %s5706_s19, %s3331_s25  }
 0x7c3 PF: > { %s3356_s8 = sand.u32 1, %s4854_s21   ;;  %p5809_p8 = scmp.ne.s32.totalorder %s5788_s17, 0 }
 0x7c4   : > { %p5810_p6 = scmp.ge.s32.totalorder %s4866_s24, 2  ;;  %s3357_s20 = scalar_lea.sflag [#allocation4], %s3356_s8 }
 0x7c6   : > { %p4491_p10 = pnand %p5810_p6, %p5809_p8 }
 0x7c8   : > { %4849 = dma.done.wait (!%p4491_p10), %s3357_s20, 128  }
 0x7c9   : > { %4851 = vsyncadd (!%p4491_p10), %s3357_s20, 4294967168  ;;  %p33_p11 = scmp.ge.s32.totalorder %s5182_s29, 4   ;;  %s5811_s21 = smov %s4858_s22 }
 0x7ca   : > { %s5812_s22 = smov %s4862_s23  ;;  %s5813_s23 = smov %s5194_s6 }
 0x7cb   : > { %s5814_s24 = smov %s5182_s29  ;;  %35 = sbr.rel (!%p33_p11) target bundleno = 19 (0x13), region = 166 }
 0x7d2   :  { %3362 = vsyncpa [#allocation3], 1 }
 0x7d3   :  { %3364 = vsyncpa [#allocation3 + $0x1], 1 }
 0x7d4   :  { %3365 = vsyncpa [#allocation6], 1 }
 0x7d5   :  { %3366 = vsyncpa [#allocation9], 1 }
 0x7d6   :  { %3367 = vsyncpa [#allocation12], 1 }
 0x7d7   :  { %3368 = vsyncpa [#allocation15], 1 }
 0x7d8   :  { %3369 = vsyncpa [#allocation4], 1 }
 0x7d9   :  { %3371 = vsyncpa [#allocation4 + $0x1], 1 }

</bundles_post_ra>
